<compile_context>
chip_gen: v7x
topology: tpu7x:2x2x1
jax: 0.10.0
libtpu: 0.0.40
codegen_flags: <defaults>
</compile_context>

<pallas_src>
import functools

import jax
import jax.numpy as jnp
from jax.experimental import pallas as pl
from jax.experimental.pallas import tpu as pltpu

_OUT_LANES = 128  # packed output width: [readout (out_dim) | prob (1) | zero pad]


# -----------------------------------------------------------------------------
# Fused kernel: one grid step = G graphs (M = G*N folded nodes)
# -----------------------------------------------------------------------------
def _fused_kernel(adj_ref, feat_ref, *rest, num_layers, num_rel, n_nodes,
                  graphs_per_step, out_dim, mxu_dtype):
    """refs layout (inputs then outputs):

      adj_ref   (1, R, M, M)   block-diag TRANSPOSED adjacency: [r, src, dst]
      feat_ref  (1, Din, M)    transposed node features of this chunk
      per layer: w_ref (R*Dout, Din)  merged W^T,  b_ref (Dout, 1)
      gate_w (1, Dout), gate_b (1, 1)
      fc1_w (Dout, 100), fc1_b (1, 100)
      fc2_w (100, 64),  fc2_b (1, 64)
      fc3_w (1, 64),    fc3_b (1, 1)
      out_ref (G, 128)   packed [readout | prob | 0]
    """
    refs = list(rest)
    layer_refs = [(refs[2 * l], refs[2 * l + 1]) for l in range(num_layers)]
    k = 2 * num_layers
    (gate_w_ref, gate_b_ref, fc1_w_ref, fc1_b_ref,
     fc2_w_ref, fc2_b_ref, fc3_w_ref, fc3_b_ref) = refs[k:k + 8]
    out_ref = refs[k + 8]

    G, N = graphs_per_step, n_nodes

    # --- RelGraphConv stack:  h <- sum_r A[r] @ (h @ W[r]) + b  ---------------
    # Carried transposed: hT (D, M), node axis on lanes (lane-dense outputs).
    hT = feat_ref[0]                                            # (Din, M)
    for w_ref, b_ref in layer_refs:
        dout = b_ref.shape[0]
        # Din contraction for ALL relations in a single MXU matmul.
        msgT = jnp.dot(w_ref[...], hT.astype(mxu_dtype),
                       preferred_element_type=jnp.float32)      # (R*Dout, M)
        msgT = msgT.astype(mxu_dtype)
        # Relation aggregation: running accumulator; LHS row slices of msgT are
        # sublane-aligned vreg selections, RHS is a full (M, M) adjacency tile.
        # TODO(synk): folding this into one (Dout, R*M)-style matmul needs an
        #             in-kernel (R*Dout, M) relayout; kept as an accumulating
        #             loop for lowering robustness (also MRB-friendly on v7x).
        acc = None
        for r in range(num_rel):
            part = jnp.dot(msgT[r * dout:(r + 1) * dout, :], adj_ref[0, r],
                           preferred_element_type=jnp.float32)  # (Dout, M)
            acc = part if acc is None else acc + part
        hT = acc + b_ref[...]                                   # bias (Dout,1) bcast
        # (dropout is identity at inference time)

    # --- GlobalAttentionPooling: per-graph softmax over nodes -----------------
    h = jnp.transpose(hT)                                       # (M, Dout) f32
    # gate_nn is a width-1 linear: VPU multiply + lane reduce (no MXU pass).
    gate_logits = (jnp.sum(h * gate_w_ref[...], axis=1, keepdims=True)
                   + gate_b_ref[...])                           # (M, 1)
    readouts = []
    for g in range(G):                                          # unrolled, G small
        rows = slice(g * N, (g + 1) * N)                        # sublane-aligned
        hg = h[rows, :]                                         # (N, Dout)
        lg = gate_logits[rows, :]                               # (N, 1)
        lg = lg - jnp.max(lg, axis=0, keepdims=True)
        p = jnp.exp(lg)
        att = p / jnp.sum(p, axis=0, keepdims=True)             # softmax over nodes
        readouts.append(jnp.sum(hg * att, axis=0, keepdims=True))   # (1, Dout)
    readout = jnp.concatenate(readouts, axis=0)                 # (G, Dout)

    # --- MLP classifier + Sigmoid (all G graphs at once) ----------------------
    z = jnp.dot(readout, fc1_w_ref[...],
                preferred_element_type=jnp.float32) + fc1_b_ref[...]
    z = jnp.maximum(z, 0.0)
    z = jnp.dot(z, fc2_w_ref[...],
                preferred_element_type=jnp.float32) + fc2_b_ref[...]
    z = jnp.maximum(z, 0.0)
    # fc3 output width is 1: VPU multiply + lane reduce instead of a 1-lane MXU dot.
    logit = jnp.sum(z * fc3_w_ref[...], axis=1, keepdims=True) + fc3_b_ref[...]
    prob = jax.nn.sigmoid(logit)                                # (G, 1)

    # --- single lane-dense packed store: [readout | prob | 0] -> (G, 128) -----
    pad = out_ref.shape[1] - out_dim - 1
    packed = jnp.concatenate(
        [readout, prob, jnp.zeros((G, pad), jnp.float32)], axis=1)
    out_ref[...] = packed.astype(out_ref.dtype)


def _const_index_map(ndim):
    return lambda c: (0,) * ndim


# -----------------------------------------------------------------------------
# Wrapper: parameter / adjacency prep (plain JAX) + one gridded pallas_call
# -----------------------------------------------------------------------------
def my_graph_model_forward(params, node_feat, adj, *, graphs_per_step=None,
                           mxu_dtype=jnp.float32):
    """node_feat: (B, N, Din); adj: (B, R, N, N) with adj[b, r, dst, src].

    Returns (prob (B, 1), readout (B, out_dim)).
    """
    B, N, Din = node_feat.shape
    R = adj.shape[1]
    layers = [params["in_layer"]] + list(params["h_layers"]) + [params["out_layer"]]
    L = len(layers)
    out_dim = layers[-1][0].shape[2]
    assert out_dim + 1 <= _OUT_LANES

    # Fold G graphs per grid step so the matmul lane dim M = G*N reaches ~128.
    if graphs_per_step is None:
        graphs_per_step = max(1, min(B, 128 // max(N, 1)))
        while B % graphs_per_step:
            graphs_per_step -= 1
    G = graphs_per_step
    if G % 8 != 0 and G != B:     # keep the (G, 128) output block (8,128)-legal
        G = B
    assert B % G == 0
    C = B // G
    M = G * N

    # Block-diagonal, per-relation TRANSPOSED adjacency per chunk:
    #   adjT[c, r, g*N + src, g*N + dst] = adj[c*G + g, r, dst, src]
    adj_c = jnp.swapaxes(adj.reshape(C, G, R, N, N), -1, -2)
    eye = jnp.eye(G, dtype=adj.dtype)
    adjT = jnp.einsum("cgrij,gh->crgihj", adj_c, eye).reshape(C, R, M, M)
    adjT = adjT.astype(mxu_dtype)

    # Transposed features per chunk: (C, Din, M), lane index = g*N + n.
    featT = jnp.swapaxes(node_feat.reshape(C, M, Din), -1, -2).astype(mxu_dtype)

    # Merge per-relation weights (R, Din, Dout) -> (R*Dout, Din) = stacked W_r^T.
    weight_args = []
    for W, b in layers:
        r_, din_l, dout_l = W.shape
        wT = jnp.transpose(W, (0, 2, 1)).reshape(r_ * dout_l, din_l).astype(mxu_dtype)
        weight_args += [wT, jnp.reshape(b, (dout_l, 1)).astype(jnp.float32)]
    gw, gb = params["gate"]
    weight_args += [jnp.reshape(gw, (1, out_dim)).astype(jnp.float32),
                    gb.astype(jnp.float32)]
    weight_args += [params["fc1"][0].astype(jnp.float32),
                    params["fc1"][1].astype(jnp.float32),
                    params["fc2"][0].astype(jnp.float32),
                    params["fc2"][1].astype(jnp.float32)]
    w3, b3 = params["fc3"]
    weight_args += [jnp.reshape(w3, (1, w3.shape[0])).astype(jnp.float32),
                    b3.astype(jnp.float32)]

    in_specs = [
        pl.BlockSpec((1, R, M, M), lambda c: (c, 0, 0, 0)),
        pl.BlockSpec((1, Din, M), lambda c: (c, 0, 0)),
    ] + [pl.BlockSpec(a.shape, _const_index_map(a.ndim)) for a in weight_args]
    out_spec = pl.BlockSpec((G, _OUT_LANES), lambda c: (c, 0))

    # Advisory cost estimate so XLA schedules this tiny kernel sensibly.
    f1 = params["fc1"][0].shape[1]
    f2 = params["fc2"][0].shape[1]
    flops = 0
    for W, _ in layers:
        r_, din_l, dout_l = W.shape
        flops += C * (2 * (r_ * dout_l) * din_l * M + 2 * r_ * dout_l * M * M)
    flops += C * (2 * M * out_dim + 2 * G * (out_dim * f1 + f1 * f2 + f2))
    bytes_accessed = (sum(int(a.size) * a.dtype.itemsize
                          for a in [adjT, featT] + weight_args)
                      + B * _OUT_LANES * 4)
    cost = pl.CostEstimate(flops=int(flops), transcendentals=int(C * (M + G)),
                           bytes_accessed=int(bytes_accessed))

    kernel = functools.partial(
        _fused_kernel, num_layers=L, num_rel=R, n_nodes=N,
        graphs_per_step=G, out_dim=out_dim, mxu_dtype=mxu_dtype)

    packed = pl.pallas_call(
        kernel,
        out_shape=jax.ShapeDtypeStruct((B, _OUT_LANES), jnp.float32),
        grid=(C,),
        in_specs=in_specs,
        out_specs=out_spec,
        compiler_params=pltpu.CompilerParams(
            dimension_semantics=("parallel",)),   # v7x: chunks across both TCs
        cost_estimate=cost,
    )(adjT, featT, *weight_args)

    readout = packed[:, :out_dim]
    prob = packed[:, out_dim:out_dim + 1]
    return prob, readout


# -----------------------------------------------------------------------------
# Parameter setup + pure-JAX reference (numerical sanity check)
# -----------------------------------------------------------------------------
def init_params(key, feature_size, h_dim, out_dim, num_relations, num_hidden_layers):
    keys = iter(jax.random.split(key, num_hidden_layers + 12))

    def dense(kk, shape, scale=0.05):
        return (scale * jax.random.normal(kk, shape)).astype(jnp.float32)

    def rel_layer(kk, din, dout):
        k1, k2, k3 = jax.random.split(kk, 3)
        # basis regularizer (num_bases == num_relations): W_r = sum_b comp[r,b] V[b]
        V = dense(k1, (num_relations, din, dout))
        comp = dense(k2, (num_relations, num_relations), 0.5)
        W = jnp.einsum("rb,bio->rio", comp, V)
        b = dense(k3, (1, dout))
        return W, b

    params = {}
    params["in_layer"] = rel_layer(next(keys), feature_size, h_dim)
    params["h_layers"] = [rel_layer(next(keys), h_dim, h_dim)
                          for _ in range(num_hidden_layers)]
    params["out_layer"] = rel_layer(next(keys), h_dim, out_dim)
    params["gate"] = (dense(next(keys), (out_dim, 1)), dense(next(keys), (1, 1)))
    params["fc1"] = (dense(next(keys), (out_dim, 100)), dense(next(keys), (1, 100)))
    params["fc2"] = (dense(next(keys), (100, 64)), dense(next(keys), (1, 64)))
    params["fc3"] = (dense(next(keys), (64, 1)), dense(next(keys), (1, 1)))
    return params


def forward_reference(params, node_feat, adj):
    layers = [params["in_layer"]] + list(params["h_layers"]) + [params["out_layer"]]

    def per_graph(feat_g, adj_g):
        h = feat_g
        for W, b in layers:
            msg = jnp.einsum("nk,rkd->rnd", h, W)
            h = jnp.einsum("rij,rjd->id", adj_g, msg) + b
        gw, gb = params["gate"]
        gate = jax.nn.softmax(h @ gw + gb, axis=0)
        readout = jnp.sum(h * gate, axis=0, keepdims=True)
        z = jax.nn.relu(readout @ params["fc1"][0] + params["fc1"][1])
        z = jax.nn.relu(z @ params["fc2"][0] + params["fc2"][1])
        prob = jax.nn.sigmoid(z @ params["fc3"][0] + params["fc3"][1])
        return prob[0, 0], readout[0]

    probs, readouts = jax.vmap(per_graph)(node_feat, adj)
    return probs[:, None], readouts


if __name__ == "__main__":
    # Small deterministic config (mirrors args.* of the module).
    feature_size = 32          # args.feature_size
    h_dim = out_dim = 32       # args.graph_embed_size
    num_relations = 4          # args.num_relations
    num_hidden_layers = 1      # args.num_hidden_layers
    B = 16                     # batch of graphs (8 fold to M = 128 per grid step)
    N_NODES = 16
    N_EDGES = 48

    key = jax.random.PRNGKey(0)
    k_feat, k_src, k_dst, k_rel, k_par = jax.random.split(key, 5)

    node_feat = jax.random.normal(k_feat, (B, N_NODES, feature_size),
                                  dtype=jnp.float32)

    # Deterministic random multigraphs -> dense per-relation adjacency
    # adj[b, r, dst, src] = #edges of relation r from src to dst in graph b.
    src = jax.random.randint(k_src, (B, N_EDGES), 0, N_NODES)
    dst = jax.random.randint(k_dst, (B, N_EDGES), 0, N_NODES)
    rel = jax.random.randint(k_rel, (B, N_EDGES), 0, num_relations)
    adj = jnp.zeros((B, num_relations, N_NODES, N_NODES), dtype=jnp.float32)
    adj = adj.at[jnp.arange(B)[:, None], rel, dst, src].add(1.0)

    params = init_params(k_par, feature_size, h_dim, out_dim,
                         num_relations, num_hidden_layers)

    # --- f32 path: strict check against the pure-JAX reference ---------------
    fwd = jax.jit(functools.partial(my_graph_model_forward, mxu_dtype=jnp.float32))
    prob, readout = fwd(params, node_feat, adj)
    jax.block_until_ready((prob, readout))

    prob_ref, readout_ref = forward_reference(params, node_feat, adj)
    assert prob.shape == (B, 1) and readout.shape == (B, out_dim)
    assert bool(jnp.all(jnp.isfinite(prob)))
    assert bool(jnp.all((prob >= 0.0) & (prob <= 1.0)))
    assert bool(jnp.allclose(readout, readout_ref, rtol=1e-2, atol=1e-3))
    assert bool(jnp.allclose(prob, prob_ref, rtol=1e-2, atol=1e-3))

    # --- bf16 MXU-operand path (v6e/v7x review item): loose check ------------
    fwd_bf16 = jax.jit(functools.partial(my_graph_model_forward,
                                         mxu_dtype=jnp.bfloat16))
    prob16, readout16 = fwd_bf16(params, node_feat, adj)
    jax.block_until_ready((prob16, readout16))
    assert bool(jnp.all(jnp.isfinite(prob16)))
    assert bool(jnp.all(jnp.isfinite(readout16)))
    assert bool(jnp.allclose(prob16, prob_ref, rtol=5e-2, atol=5e-2))

    print("KERNEL_OK")
</pallas_src>

<mosaic_0001>
module attributes {stable_mosaic.version = 11 : i64} {
  func.func @_fused_kernel(%arg0: i32, %arg1: memref<1x4x128x128xf32, #tpu.memory_space<vmem>>, %arg2: memref<1x32x128xf32, #tpu.memory_space<vmem>>, %arg3: memref<128x32xf32, #tpu.memory_space<vmem>>, %arg4: memref<32x1xf32, #tpu.memory_space<vmem>>, %arg5: memref<128x32xf32, #tpu.memory_space<vmem>>, %arg6: memref<32x1xf32, #tpu.memory_space<vmem>>, %arg7: memref<128x32xf32, #tpu.memory_space<vmem>>, %arg8: memref<32x1xf32, #tpu.memory_space<vmem>>, %arg9: memref<1x32xf32, #tpu.memory_space<vmem>>, %arg10: memref<1x1xf32, #tpu.memory_space<vmem>>, %arg11: memref<32x100xf32, #tpu.memory_space<vmem>>, %arg12: memref<1x100xf32, #tpu.memory_space<vmem>>, %arg13: memref<100x64xf32, #tpu.memory_space<vmem>>, %arg14: memref<1x64xf32, #tpu.memory_space<vmem>>, %arg15: memref<1x64xf32, #tpu.memory_space<vmem>>, %arg16: memref<1x1xf32, #tpu.memory_space<vmem>>, %arg17: memref<8x128xf32, #tpu.memory_space<vmem>>) attributes {dimension_semantics = [#tpu.dimension_semantics<parallel>], iteration_bounds = array<i64: 2>, scalar_prefetch = 0 : i64, scratch_operands = 0 : i64, tpu.core_type = #tpu.core_type<tc>, window_params = [{transform_indices = @transform_0, window_bounds = array<i64: 1, 4, 128, 128>}, {transform_indices = @transform_1, window_bounds = array<i64: 1, 32, 128>}, {pipeline_mode = #tpu.pipeline_mode<synchronous>, transform_indices = @transform_2, window_bounds = array<i64: 128, 32>}, {pipeline_mode = #tpu.pipeline_mode<synchronous>, transform_indices = @transform_3, window_bounds = array<i64: 32, 1>}, {pipeline_mode = #tpu.pipeline_mode<synchronous>, transform_indices = @transform_4, window_bounds = array<i64: 128, 32>}, {pipeline_mode = #tpu.pipeline_mode<synchronous>, transform_indices = @transform_5, window_bounds = array<i64: 32, 1>}, {pipeline_mode = #tpu.pipeline_mode<synchronous>, transform_indices = @transform_6, window_bounds = array<i64: 128, 32>}, {pipeline_mode = #tpu.pipeline_mode<synchronous>, transform_indices = @transform_7, window_bounds = array<i64: 32, 1>}, {pipeline_mode = #tpu.pipeline_mode<synchronous>, transform_indices = @transform_8, window_bounds = array<i64: 1, 32>}, {pipeline_mode = #tpu.pipeline_mode<synchronous>, transform_indices = @transform_9, window_bounds = array<i64: 1, 1>}, {pipeline_mode = #tpu.pipeline_mode<synchronous>, transform_indices = @transform_10, window_bounds = array<i64: 32, 100>}, {pipeline_mode = #tpu.pipeline_mode<synchronous>, transform_indices = @transform_11, window_bounds = array<i64: 1, 100>}, {pipeline_mode = #tpu.pipeline_mode<synchronous>, transform_indices = @transform_12, window_bounds = array<i64: 100, 64>}, {pipeline_mode = #tpu.pipeline_mode<synchronous>, transform_indices = @transform_13, window_bounds = array<i64: 1, 64>}, {pipeline_mode = #tpu.pipeline_mode<synchronous>, transform_indices = @transform_14, window_bounds = array<i64: 1, 64>}, {pipeline_mode = #tpu.pipeline_mode<synchronous>, transform_indices = @transform_15, window_bounds = array<i64: 1, 1>}, {transform_indices = @transform_16, window_bounds = array<i64: 8, 128>}]} {
    %c0 = arith.constant 0 : index
    %c0_0 = arith.constant 0 : index
    %c0_1 = arith.constant 0 : index
    %0 = vector.load %arg2[%c0, %c0_0, %c0_1] : memref<1x32x128xf32, #tpu.memory_space<vmem>>, vector<1x32x128xf32>
    %1 = vector.shape_cast %0 : vector<1x32x128xf32> to vector<32x128xf32>
    %c0_2 = arith.constant 0 : index
    %c0_3 = arith.constant 0 : index
    %2 = vector.load %arg3[%c0_2, %c0_3] : memref<128x32xf32, #tpu.memory_space<vmem>>, vector<128x32xf32>
    %cst = arith.constant dense<0.000000e+00> : vector<128x128xf32>
    %3 = tpu.matmul %2, %1, %cst {dimension_numbers = #tpu.dot_dimension_numbers<[1], [0], [0], [1], [0, 0, 1, 1], [], []>} : vector<128x32xf32>, vector<32x128xf32>, vector<128x128xf32> -> vector<128x128xf32>
    %4 = vector.extract_strided_slice %3 {offsets = [0, 0], sizes = [32, 128], strides = [1, 1]} : vector<128x128xf32> to vector<32x128xf32>
    %c0_4 = arith.constant 0 : index
    %c0_5 = arith.constant 0 : index
    %c0_6 = arith.constant 0 : index
    %c0_7 = arith.constant 0 : index
    %5 = vector.load %arg1[%c0_4, %c0_5, %c0_6, %c0_7] : memref<1x4x128x128xf32, #tpu.memory_space<vmem>>, vector<1x1x128x128xf32>
    %6 = vector.shape_cast %5 : vector<1x1x128x128xf32> to vector<128x128xf32>
    %cst_8 = arith.constant dense<0.000000e+00> : vector<32x128xf32>
    %7 = tpu.matmul %4, %6, %cst_8 {dimension_numbers = #tpu.dot_dimension_numbers<[1], [0], [0], [1], [0, 0, 1, 1], [], []>} : vector<32x128xf32>, vector<128x128xf32>, vector<32x128xf32> -> vector<32x128xf32>
    %8 = vector.extract_strided_slice %3 {offsets = [32, 0], sizes = [32, 128], strides = [1, 1]} : vector<128x128xf32> to vector<32x128xf32>
    %c0_9 = arith.constant 0 : index
    %c1 = arith.constant 1 : index
    %c0_10 = arith.constant 0 : index
    %c0_11 = arith.constant 0 : index
    %9 = vector.load %arg1[%c0_9, %c1, %c0_10, %c0_11] : memref<1x4x128x128xf32, #tpu.memory_space<vmem>>, vector<1x1x128x128xf32>
    %10 = vector.shape_cast %9 : vector<1x1x128x128xf32> to vector<128x128xf32>
    %cst_12 = arith.constant dense<0.000000e+00> : vector<32x128xf32>
    %11 = tpu.matmul %8, %10, %cst_12 {dimension_numbers = #tpu.dot_dimension_numbers<[1], [0], [0], [1], [0, 0, 1, 1], [], []>} : vector<32x128xf32>, vector<128x128xf32>, vector<32x128xf32> -> vector<32x128xf32>
    %12 = arith.addf %7, %11 : vector<32x128xf32>
    %13 = vector.extract_strided_slice %3 {offsets = [64, 0], sizes = [32, 128], strides = [1, 1]} : vector<128x128xf32> to vector<32x128xf32>
    %c0_13 = arith.constant 0 : index
    %c2 = arith.constant 2 : index
    %c0_14 = arith.constant 0 : index
    %c0_15 = arith.constant 0 : index
    %14 = vector.load %arg1[%c0_13, %c2, %c0_14, %c0_15] : memref<1x4x128x128xf32, #tpu.memory_space<vmem>>, vector<1x1x128x128xf32>
    %15 = vector.shape_cast %14 : vector<1x1x128x128xf32> to vector<128x128xf32>
    %cst_16 = arith.constant dense<0.000000e+00> : vector<32x128xf32>
    %16 = tpu.matmul %13, %15, %cst_16 {dimension_numbers = #tpu.dot_dimension_numbers<[1], [0], [0], [1], [0, 0, 1, 1], [], []>} : vector<32x128xf32>, vector<128x128xf32>, vector<32x128xf32> -> vector<32x128xf32>
    %17 = arith.addf %12, %16 : vector<32x128xf32>
    %18 = vector.extract_strided_slice %3 {offsets = [96, 0], sizes = [32, 128], strides = [1, 1]} : vector<128x128xf32> to vector<32x128xf32>
    %c0_17 = arith.constant 0 : index
    %c3 = arith.constant 3 : index
    %c0_18 = arith.constant 0 : index
    %c0_19 = arith.constant 0 : index
    %19 = vector.load %arg1[%c0_17, %c3, %c0_18, %c0_19] : memref<1x4x128x128xf32, #tpu.memory_space<vmem>>, vector<1x1x128x128xf32>
    %20 = vector.shape_cast %19 : vector<1x1x128x128xf32> to vector<128x128xf32>
    %cst_20 = arith.constant dense<0.000000e+00> : vector<32x128xf32>
    %21 = tpu.matmul %18, %20, %cst_20 {dimension_numbers = #tpu.dot_dimension_numbers<[1], [0], [0], [1], [0, 0, 1, 1], [], []>} : vector<32x128xf32>, vector<128x128xf32>, vector<32x128xf32> -> vector<32x128xf32>
    %22 = arith.addf %17, %21 : vector<32x128xf32>
    %c0_21 = arith.constant 0 : index
    %c0_22 = arith.constant 0 : index
    %23 = vector.load %arg4[%c0_21, %c0_22] : memref<32x1xf32, #tpu.memory_space<vmem>>, vector<32x1xf32>
    %24 = vector.broadcast %23 : vector<32x1xf32> to vector<32x128xf32>
    %25 = arith.addf %22, %24 : vector<32x128xf32>
    %c0_23 = arith.constant 0 : index
    %c0_24 = arith.constant 0 : index
    %26 = vector.load %arg5[%c0_23, %c0_24] : memref<128x32xf32, #tpu.memory_space<vmem>>, vector<128x32xf32>
    %cst_25 = arith.constant dense<0.000000e+00> : vector<128x128xf32>
    %27 = tpu.matmul %26, %25, %cst_25 {dimension_numbers = #tpu.dot_dimension_numbers<[1], [0], [0], [1], [0, 0, 1, 1], [], []>} : vector<128x32xf32>, vector<32x128xf32>, vector<128x128xf32> -> vector<128x128xf32>
    %28 = vector.extract_strided_slice %27 {offsets = [0, 0], sizes = [32, 128], strides = [1, 1]} : vector<128x128xf32> to vector<32x128xf32>
    %c0_26 = arith.constant 0 : index
    %c0_27 = arith.constant 0 : index
    %c0_28 = arith.constant 0 : index
    %c0_29 = arith.constant 0 : index
    %29 = vector.load %arg1[%c0_26, %c0_27, %c0_28, %c0_29] : memref<1x4x128x128xf32, #tpu.memory_space<vmem>>, vector<1x1x128x128xf32>
    %30 = vector.shape_cast %29 : vector<1x1x128x128xf32> to vector<128x128xf32>
    %cst_30 = arith.constant dense<0.000000e+00> : vector<32x128xf32>
    %31 = tpu.matmul %28, %30, %cst_30 {dimension_numbers = #tpu.dot_dimension_numbers<[1], [0], [0], [1], [0, 0, 1, 1], [], []>} : vector<32x128xf32>, vector<128x128xf32>, vector<32x128xf32> -> vector<32x128xf32>
    %32 = vector.extract_strided_slice %27 {offsets = [32, 0], sizes = [32, 128], strides = [1, 1]} : vector<128x128xf32> to vector<32x128xf32>
    %c0_31 = arith.constant 0 : index
    %c1_32 = arith.constant 1 : index
    %c0_33 = arith.constant 0 : index
    %c0_34 = arith.constant 0 : index
    %33 = vector.load %arg1[%c0_31, %c1_32, %c0_33, %c0_34] : memref<1x4x128x128xf32, #tpu.memory_space<vmem>>, vector<1x1x128x128xf32>
    %34 = vector.shape_cast %33 : vector<1x1x128x128xf32> to vector<128x128xf32>
    %cst_35 = arith.constant dense<0.000000e+00> : vector<32x128xf32>
    %35 = tpu.matmul %32, %34, %cst_35 {dimension_numbers = #tpu.dot_dimension_numbers<[1], [0], [0], [1], [0, 0, 1, 1], [], []>} : vector<32x128xf32>, vector<128x128xf32>, vector<32x128xf32> -> vector<32x128xf32>
    %36 = arith.addf %31, %35 : vector<32x128xf32>
    %37 = vector.extract_strided_slice %27 {offsets = [64, 0], sizes = [32, 128], strides = [1, 1]} : vector<128x128xf32> to vector<32x128xf32>
    %c0_36 = arith.constant 0 : index
    %c2_37 = arith.constant 2 : index
    %c0_38 = arith.constant 0 : index
    %c0_39 = arith.constant 0 : index
    %38 = vector.load %arg1[%c0_36, %c2_37, %c0_38, %c0_39] : memref<1x4x128x128xf32, #tpu.memory_space<vmem>>, vector<1x1x128x128xf32>
    %39 = vector.shape_cast %38 : vector<1x1x128x128xf32> to vector<128x128xf32>
    %cst_40 = arith.constant dense<0.000000e+00> : vector<32x128xf32>
    %40 = tpu.matmul %37, %39, %cst_40 {dimension_numbers = #tpu.dot_dimension_numbers<[1], [0], [0], [1], [0, 0, 1, 1], [], []>} : vector<32x128xf32>, vector<128x128xf32>, vector<32x128xf32> -> vector<32x128xf32>
    %41 = arith.addf %36, %40 : vector<32x128xf32>
    %42 = vector.extract_strided_slice %27 {offsets = [96, 0], sizes = [32, 128], strides = [1, 1]} : vector<128x128xf32> to vector<32x128xf32>
    %c0_41 = arith.constant 0 : index
    %c3_42 = arith.constant 3 : index
    %c0_43 = arith.constant 0 : index
    %c0_44 = arith.constant 0 : index
    %43 = vector.load %arg1[%c0_41, %c3_42, %c0_43, %c0_44] : memref<1x4x128x128xf32, #tpu.memory_space<vmem>>, vector<1x1x128x128xf32>
    %44 = vector.shape_cast %43 : vector<1x1x128x128xf32> to vector<128x128xf32>
    %cst_45 = arith.constant dense<0.000000e+00> : vector<32x128xf32>
    %45 = tpu.matmul %42, %44, %cst_45 {dimension_numbers = #tpu.dot_dimension_numbers<[1], [0], [0], [1], [0, 0, 1, 1], [], []>} : vector<32x128xf32>, vector<128x128xf32>, vector<32x128xf32> -> vector<32x128xf32>
    %46 = arith.addf %41, %45 : vector<32x128xf32>
    %c0_46 = arith.constant 0 : index
    %c0_47 = arith.constant 0 : index
    %47 = vector.load %arg6[%c0_46, %c0_47] : memref<32x1xf32, #tpu.memory_space<vmem>>, vector<32x1xf32>
    %48 = vector.broadcast %47 : vector<32x1xf32> to vector<32x128xf32>
    %49 = arith.addf %46, %48 : vector<32x128xf32>
    %c0_48 = arith.constant 0 : index
    %c0_49 = arith.constant 0 : index
    %50 = vector.load %arg7[%c0_48, %c0_49] : memref<128x32xf32, #tpu.memory_space<vmem>>, vector<128x32xf32>
    %cst_50 = arith.constant dense<0.000000e+00> : vector<128x128xf32>
    %51 = tpu.matmul %50, %49, %cst_50 {dimension_numbers = #tpu.dot_dimension_numbers<[1], [0], [0], [1], [0, 0, 1, 1], [], []>} : vector<128x32xf32>, vector<32x128xf32>, vector<128x128xf32> -> vector<128x128xf32>
    %52 = vector.extract_strided_slice %51 {offsets = [0, 0], sizes = [32, 128], strides = [1, 1]} : vector<128x128xf32> to vector<32x128xf32>
    %c0_51 = arith.constant 0 : index
    %c0_52 = arith.constant 0 : index
    %c0_53 = arith.constant 0 : index
    %c0_54 = arith.constant 0 : index
    %53 = vector.load %arg1[%c0_51, %c0_52, %c0_53, %c0_54] : memref<1x4x128x128xf32, #tpu.memory_space<vmem>>, vector<1x1x128x128xf32>
    %54 = vector.shape_cast %53 : vector<1x1x128x128xf32> to vector<128x128xf32>
    %cst_55 = arith.constant dense<0.000000e+00> : vector<32x128xf32>
    %55 = tpu.matmul %52, %54, %cst_55 {dimension_numbers = #tpu.dot_dimension_numbers<[1], [0], [0], [1], [0, 0, 1, 1], [], []>} : vector<32x128xf32>, vector<128x128xf32>, vector<32x128xf32> -> vector<32x128xf32>
    %56 = vector.extract_strided_slice %51 {offsets = [32, 0], sizes = [32, 128], strides = [1, 1]} : vector<128x128xf32> to vector<32x128xf32>
    %c0_56 = arith.constant 0 : index
    %c1_57 = arith.constant 1 : index
    %c0_58 = arith.constant 0 : index
    %c0_59 = arith.constant 0 : index
    %57 = vector.load %arg1[%c0_56, %c1_57, %c0_58, %c0_59] : memref<1x4x128x128xf32, #tpu.memory_space<vmem>>, vector<1x1x128x128xf32>
    %58 = vector.shape_cast %57 : vector<1x1x128x128xf32> to vector<128x128xf32>
    %cst_60 = arith.constant dense<0.000000e+00> : vector<32x128xf32>
    %59 = tpu.matmul %56, %58, %cst_60 {dimension_numbers = #tpu.dot_dimension_numbers<[1], [0], [0], [1], [0, 0, 1, 1], [], []>} : vector<32x128xf32>, vector<128x128xf32>, vector<32x128xf32> -> vector<32x128xf32>
    %60 = arith.addf %55, %59 : vector<32x128xf32>
    %61 = vector.extract_strided_slice %51 {offsets = [64, 0], sizes = [32, 128], strides = [1, 1]} : vector<128x128xf32> to vector<32x128xf32>
    %c0_61 = arith.constant 0 : index
    %c2_62 = arith.constant 2 : index
    %c0_63 = arith.constant 0 : index
    %c0_64 = arith.constant 0 : index
    %62 = vector.load %arg1[%c0_61, %c2_62, %c0_63, %c0_64] : memref<1x4x128x128xf32, #tpu.memory_space<vmem>>, vector<1x1x128x128xf32>
    %63 = vector.shape_cast %62 : vector<1x1x128x128xf32> to vector<128x128xf32>
    %cst_65 = arith.constant dense<0.000000e+00> : vector<32x128xf32>
    %64 = tpu.matmul %61, %63, %cst_65 {dimension_numbers = #tpu.dot_dimension_numbers<[1], [0], [0], [1], [0, 0, 1, 1], [], []>} : vector<32x128xf32>, vector<128x128xf32>, vector<32x128xf32> -> vector<32x128xf32>
    %65 = arith.addf %60, %64 : vector<32x128xf32>
    %66 = vector.extract_strided_slice %51 {offsets = [96, 0], sizes = [32, 128], strides = [1, 1]} : vector<128x128xf32> to vector<32x128xf32>
    %c0_66 = arith.constant 0 : index
    %c3_67 = arith.constant 3 : index
    %c0_68 = arith.constant 0 : index
    %c0_69 = arith.constant 0 : index
    %67 = vector.load %arg1[%c0_66, %c3_67, %c0_68, %c0_69] : memref<1x4x128x128xf32, #tpu.memory_space<vmem>>, vector<1x1x128x128xf32>
    %68 = vector.shape_cast %67 : vector<1x1x128x128xf32> to vector<128x128xf32>
    %cst_70 = arith.constant dense<0.000000e+00> : vector<32x128xf32>
    %69 = tpu.matmul %66, %68, %cst_70 {dimension_numbers = #tpu.dot_dimension_numbers<[1], [0], [0], [1], [0, 0, 1, 1], [], []>} : vector<32x128xf32>, vector<128x128xf32>, vector<32x128xf32> -> vector<32x128xf32>
    %70 = arith.addf %65, %69 : vector<32x128xf32>
    %c0_71 = arith.constant 0 : index
    %c0_72 = arith.constant 0 : index
    %71 = vector.load %arg8[%c0_71, %c0_72] : memref<32x1xf32, #tpu.memory_space<vmem>>, vector<32x1xf32>
    %72 = vector.broadcast %71 : vector<32x1xf32> to vector<32x128xf32>
    %73 = arith.addf %70, %72 : vector<32x128xf32>
    %74 = tpu.transpose %73, [1, 0] : vector<32x128xf32> -> vector<128x32xf32>
    %c0_73 = arith.constant 0 : index
    %c0_74 = arith.constant 0 : index
    %75 = vector.load %arg9[%c0_73, %c0_74] : memref<1x32xf32, #tpu.memory_space<vmem>>, vector<1x32xf32>
    %76 = vector.broadcast %75 : vector<1x32xf32> to vector<128x32xf32>
    %77 = arith.mulf %74, %76 : vector<128x32xf32>
    %cst_75 = arith.constant dense<0.000000e+00> : vector<128xf32>
    %78 = vector.multi_reduction <add>, %77, %cst_75 [1] : vector<128x32xf32> to vector<128xf32>
    %79 = vector.shape_cast %78 : vector<128xf32> to vector<128x1xf32>
    %c0_76 = arith.constant 0 : index
    %c0_77 = arith.constant 0 : index
    %80 = vector.load %arg10[%c0_76, %c0_77] : memref<1x1xf32, #tpu.memory_space<vmem>>, vector<1x1xf32>
    %81 = vector.broadcast %80 : vector<1x1xf32> to vector<128x1xf32>
    %82 = arith.addf %79, %81 : vector<128x1xf32>
    %83 = vector.extract_strided_slice %74 {offsets = [0, 0], sizes = [16, 32], strides = [1, 1]} : vector<128x32xf32> to vector<16x32xf32>
    %84 = vector.extract_strided_slice %82 {offsets = [0, 0], sizes = [16, 1], strides = [1, 1]} : vector<128x1xf32> to vector<16x1xf32>
    %cst_78 = arith.constant dense<0xFF800000> : vector<1xf32>
    %85 = vector.multi_reduction <maximumf>, %84, %cst_78 [0] : vector<16x1xf32> to vector<1xf32>
    %86 = vector.shape_cast %85 : vector<1xf32> to vector<1x1xf32>
    %87 = vector.broadcast %86 : vector<1x1xf32> to vector<16x1xf32>
    %88 = arith.subf %84, %87 : vector<16x1xf32>
    %89 = math.exp %88 : vector<16x1xf32>
    %cst_79 = arith.constant dense<0.000000e+00> : vector<1xf32>
    %90 = vector.multi_reduction <add>, %89, %cst_79 [0] : vector<16x1xf32> to vector<1xf32>
    %91 = vector.shape_cast %90 : vector<1xf32> to vector<1x1xf32>
    %92 = vector.broadcast %91 : vector<1x1xf32> to vector<16x1xf32>
    %93 = arith.divf %89, %92 : vector<16x1xf32>
    %94 = vector.broadcast %93 : vector<16x1xf32> to vector<16x32xf32>
    %95 = arith.mulf %83, %94 : vector<16x32xf32>
    %cst_80 = arith.constant dense<0.000000e+00> : vector<32xf32>
    %96 = vector.multi_reduction <add>, %95, %cst_80 [0] : vector<16x32xf32> to vector<32xf32>
    %97 = vector.shape_cast %96 : vector<32xf32> to vector<1x32xf32>
    %98 = vector.extract_strided_slice %74 {offsets = [16, 0], sizes = [16, 32], strides = [1, 1]} : vector<128x32xf32> to vector<16x32xf32>
    %99 = vector.extract_strided_slice %82 {offsets = [16, 0], sizes = [16, 1], strides = [1, 1]} : vector<128x1xf32> to vector<16x1xf32>
    %cst_81 = arith.constant dense<0xFF800000> : vector<1xf32>
    %100 = vector.multi_reduction <maximumf>, %99, %cst_81 [0] : vector<16x1xf32> to vector<1xf32>
    %101 = vector.shape_cast %100 : vector<1xf32> to vector<1x1xf32>
    %102 = vector.broadcast %101 : vector<1x1xf32> to vector<16x1xf32>
    %103 = arith.subf %99, %102 : vector<16x1xf32>
    %104 = math.exp %103 : vector<16x1xf32>
    %cst_82 = arith.constant dense<0.000000e+00> : vector<1xf32>
    %105 = vector.multi_reduction <add>, %104, %cst_82 [0] : vector<16x1xf32> to vector<1xf32>
    %106 = vector.shape_cast %105 : vector<1xf32> to vector<1x1xf32>
    %107 = vector.broadcast %106 : vector<1x1xf32> to vector<16x1xf32>
    %108 = arith.divf %104, %107 : vector<16x1xf32>
    %109 = vector.broadcast %108 : vector<16x1xf32> to vector<16x32xf32>
    %110 = arith.mulf %98, %109 : vector<16x32xf32>
    %cst_83 = arith.constant dense<0.000000e+00> : vector<32xf32>
    %111 = vector.multi_reduction <add>, %110, %cst_83 [0] : vector<16x32xf32> to vector<32xf32>
    %112 = vector.shape_cast %111 : vector<32xf32> to vector<1x32xf32>
    %113 = vector.extract_strided_slice %74 {offsets = [32, 0], sizes = [16, 32], strides = [1, 1]} : vector<128x32xf32> to vector<16x32xf32>
    %114 = vector.extract_strided_slice %82 {offsets = [32, 0], sizes = [16, 1], strides = [1, 1]} : vector<128x1xf32> to vector<16x1xf32>
    %cst_84 = arith.constant dense<0xFF800000> : vector<1xf32>
    %115 = vector.multi_reduction <maximumf>, %114, %cst_84 [0] : vector<16x1xf32> to vector<1xf32>
    %116 = vector.shape_cast %115 : vector<1xf32> to vector<1x1xf32>
    %117 = vector.broadcast %116 : vector<1x1xf32> to vector<16x1xf32>
    %118 = arith.subf %114, %117 : vector<16x1xf32>
    %119 = math.exp %118 : vector<16x1xf32>
    %cst_85 = arith.constant dense<0.000000e+00> : vector<1xf32>
    %120 = vector.multi_reduction <add>, %119, %cst_85 [0] : vector<16x1xf32> to vector<1xf32>
    %121 = vector.shape_cast %120 : vector<1xf32> to vector<1x1xf32>
    %122 = vector.broadcast %121 : vector<1x1xf32> to vector<16x1xf32>
    %123 = arith.divf %119, %122 : vector<16x1xf32>
    %124 = vector.broadcast %123 : vector<16x1xf32> to vector<16x32xf32>
    %125 = arith.mulf %113, %124 : vector<16x32xf32>
    %cst_86 = arith.constant dense<0.000000e+00> : vector<32xf32>
    %126 = vector.multi_reduction <add>, %125, %cst_86 [0] : vector<16x32xf32> to vector<32xf32>
    %127 = vector.shape_cast %126 : vector<32xf32> to vector<1x32xf32>
    %128 = vector.extract_strided_slice %74 {offsets = [48, 0], sizes = [16, 32], strides = [1, 1]} : vector<128x32xf32> to vector<16x32xf32>
    %129 = vector.extract_strided_slice %82 {offsets = [48, 0], sizes = [16, 1], strides = [1, 1]} : vector<128x1xf32> to vector<16x1xf32>
    %cst_87 = arith.constant dense<0xFF800000> : vector<1xf32>
    %130 = vector.multi_reduction <maximumf>, %129, %cst_87 [0] : vector<16x1xf32> to vector<1xf32>
    %131 = vector.shape_cast %130 : vector<1xf32> to vector<1x1xf32>
    %132 = vector.broadcast %131 : vector<1x1xf32> to vector<16x1xf32>
    %133 = arith.subf %129, %132 : vector<16x1xf32>
    %134 = math.exp %133 : vector<16x1xf32>
    %cst_88 = arith.constant dense<0.000000e+00> : vector<1xf32>
    %135 = vector.multi_reduction <add>, %134, %cst_88 [0] : vector<16x1xf32> to vector<1xf32>
    %136 = vector.shape_cast %135 : vector<1xf32> to vector<1x1xf32>
    %137 = vector.broadcast %136 : vector<1x1xf32> to vector<16x1xf32>
    %138 = arith.divf %134, %137 : vector<16x1xf32>
    %139 = vector.broadcast %138 : vector<16x1xf32> to vector<16x32xf32>
    %140 = arith.mulf %128, %139 : vector<16x32xf32>
    %cst_89 = arith.constant dense<0.000000e+00> : vector<32xf32>
    %141 = vector.multi_reduction <add>, %140, %cst_89 [0] : vector<16x32xf32> to vector<32xf32>
    %142 = vector.shape_cast %141 : vector<32xf32> to vector<1x32xf32>
    %143 = vector.extract_strided_slice %74 {offsets = [64, 0], sizes = [16, 32], strides = [1, 1]} : vector<128x32xf32> to vector<16x32xf32>
    %144 = vector.extract_strided_slice %82 {offsets = [64, 0], sizes = [16, 1], strides = [1, 1]} : vector<128x1xf32> to vector<16x1xf32>
    %cst_90 = arith.constant dense<0xFF800000> : vector<1xf32>
    %145 = vector.multi_reduction <maximumf>, %144, %cst_90 [0] : vector<16x1xf32> to vector<1xf32>
    %146 = vector.shape_cast %145 : vector<1xf32> to vector<1x1xf32>
    %147 = vector.broadcast %146 : vector<1x1xf32> to vector<16x1xf32>
    %148 = arith.subf %144, %147 : vector<16x1xf32>
    %149 = math.exp %148 : vector<16x1xf32>
    %cst_91 = arith.constant dense<0.000000e+00> : vector<1xf32>
    %150 = vector.multi_reduction <add>, %149, %cst_91 [0] : vector<16x1xf32> to vector<1xf32>
    %151 = vector.shape_cast %150 : vector<1xf32> to vector<1x1xf32>
    %152 = vector.broadcast %151 : vector<1x1xf32> to vector<16x1xf32>
    %153 = arith.divf %149, %152 : vector<16x1xf32>
    %154 = vector.broadcast %153 : vector<16x1xf32> to vector<16x32xf32>
    %155 = arith.mulf %143, %154 : vector<16x32xf32>
    %cst_92 = arith.constant dense<0.000000e+00> : vector<32xf32>
    %156 = vector.multi_reduction <add>, %155, %cst_92 [0] : vector<16x32xf32> to vector<32xf32>
    %157 = vector.shape_cast %156 : vector<32xf32> to vector<1x32xf32>
    %158 = vector.extract_strided_slice %74 {offsets = [80, 0], sizes = [16, 32], strides = [1, 1]} : vector<128x32xf32> to vector<16x32xf32>
    %159 = vector.extract_strided_slice %82 {offsets = [80, 0], sizes = [16, 1], strides = [1, 1]} : vector<128x1xf32> to vector<16x1xf32>
    %cst_93 = arith.constant dense<0xFF800000> : vector<1xf32>
    %160 = vector.multi_reduction <maximumf>, %159, %cst_93 [0] : vector<16x1xf32> to vector<1xf32>
    %161 = vector.shape_cast %160 : vector<1xf32> to vector<1x1xf32>
    %162 = vector.broadcast %161 : vector<1x1xf32> to vector<16x1xf32>
    %163 = arith.subf %159, %162 : vector<16x1xf32>
    %164 = math.exp %163 : vector<16x1xf32>
    %cst_94 = arith.constant dense<0.000000e+00> : vector<1xf32>
    %165 = vector.multi_reduction <add>, %164, %cst_94 [0] : vector<16x1xf32> to vector<1xf32>
    %166 = vector.shape_cast %165 : vector<1xf32> to vector<1x1xf32>
    %167 = vector.broadcast %166 : vector<1x1xf32> to vector<16x1xf32>
    %168 = arith.divf %164, %167 : vector<16x1xf32>
    %169 = vector.broadcast %168 : vector<16x1xf32> to vector<16x32xf32>
    %170 = arith.mulf %158, %169 : vector<16x32xf32>
    %cst_95 = arith.constant dense<0.000000e+00> : vector<32xf32>
    %171 = vector.multi_reduction <add>, %170, %cst_95 [0] : vector<16x32xf32> to vector<32xf32>
    %172 = vector.shape_cast %171 : vector<32xf32> to vector<1x32xf32>
    %173 = vector.extract_strided_slice %74 {offsets = [96, 0], sizes = [16, 32], strides = [1, 1]} : vector<128x32xf32> to vector<16x32xf32>
    %174 = vector.extract_strided_slice %82 {offsets = [96, 0], sizes = [16, 1], strides = [1, 1]} : vector<128x1xf32> to vector<16x1xf32>
    %cst_96 = arith.constant dense<0xFF800000> : vector<1xf32>
    %175 = vector.multi_reduction <maximumf>, %174, %cst_96 [0] : vector<16x1xf32> to vector<1xf32>
    %176 = vector.shape_cast %175 : vector<1xf32> to vector<1x1xf32>
    %177 = vector.broadcast %176 : vector<1x1xf32> to vector<16x1xf32>
    %178 = arith.subf %174, %177 : vector<16x1xf32>
    %179 = math.exp %178 : vector<16x1xf32>
    %cst_97 = arith.constant dense<0.000000e+00> : vector<1xf32>
    %180 = vector.multi_reduction <add>, %179, %cst_97 [0] : vector<16x1xf32> to vector<1xf32>
    %181 = vector.shape_cast %180 : vector<1xf32> to vector<1x1xf32>
    %182 = vector.broadcast %181 : vector<1x1xf32> to vector<16x1xf32>
    %183 = arith.divf %179, %182 : vector<16x1xf32>
    %184 = vector.broadcast %183 : vector<16x1xf32> to vector<16x32xf32>
    %185 = arith.mulf %173, %184 : vector<16x32xf32>
    %cst_98 = arith.constant dense<0.000000e+00> : vector<32xf32>
    %186 = vector.multi_reduction <add>, %185, %cst_98 [0] : vector<16x32xf32> to vector<32xf32>
    %187 = vector.shape_cast %186 : vector<32xf32> to vector<1x32xf32>
    %188 = vector.extract_strided_slice %74 {offsets = [112, 0], sizes = [16, 32], strides = [1, 1]} : vector<128x32xf32> to vector<16x32xf32>
    %189 = vector.extract_strided_slice %82 {offsets = [112, 0], sizes = [16, 1], strides = [1, 1]} : vector<128x1xf32> to vector<16x1xf32>
    %cst_99 = arith.constant dense<0xFF800000> : vector<1xf32>
    %190 = vector.multi_reduction <maximumf>, %189, %cst_99 [0] : vector<16x1xf32> to vector<1xf32>
    %191 = vector.shape_cast %190 : vector<1xf32> to vector<1x1xf32>
    %192 = vector.broadcast %191 : vector<1x1xf32> to vector<16x1xf32>
    %193 = arith.subf %189, %192 : vector<16x1xf32>
    %194 = math.exp %193 : vector<16x1xf32>
    %cst_100 = arith.constant dense<0.000000e+00> : vector<1xf32>
    %195 = vector.multi_reduction <add>, %194, %cst_100 [0] : vector<16x1xf32> to vector<1xf32>
    %196 = vector.shape_cast %195 : vector<1xf32> to vector<1x1xf32>
    %197 = vector.broadcast %196 : vector<1x1xf32> to vector<16x1xf32>
    %198 = arith.divf %194, %197 : vector<16x1xf32>
    %199 = vector.broadcast %198 : vector<16x1xf32> to vector<16x32xf32>
    %200 = arith.mulf %188, %199 : vector<16x32xf32>
    %cst_101 = arith.constant dense<0.000000e+00> : vector<32xf32>
    %201 = vector.multi_reduction <add>, %200, %cst_101 [0] : vector<16x32xf32> to vector<32xf32>
    %202 = vector.shape_cast %201 : vector<32xf32> to vector<1x32xf32>
    %203 = tpu.concatenate %97, %112, %127, %142, %157, %172, %187, %202 in 0 : vector<1x32xf32>, vector<1x32xf32>, vector<1x32xf32>, vector<1x32xf32>, vector<1x32xf32>, vector<1x32xf32>, vector<1x32xf32>, vector<1x32xf32> -> vector<8x32xf32>
    %c0_102 = arith.constant 0 : index
    %c0_103 = arith.constant 0 : index
    %204 = vector.load %arg11[%c0_102, %c0_103] : memref<32x100xf32, #tpu.memory_space<vmem>>, vector<32x100xf32>
    %cst_104 = arith.constant dense<0.000000e+00> : vector<8x100xf32>
    %205 = tpu.matmul %203, %204, %cst_104 {dimension_numbers = #tpu.dot_dimension_numbers<[1], [0], [0], [1], [0, 0, 1, 1], [], []>} : vector<8x32xf32>, vector<32x100xf32>, vector<8x100xf32> -> vector<8x100xf32>
    %c0_105 = arith.constant 0 : index
    %c0_106 = arith.constant 0 : index
    %206 = vector.load %arg12[%c0_105, %c0_106] : memref<1x100xf32, #tpu.memory_space<vmem>>, vector<1x100xf32>
    %207 = vector.broadcast %206 : vector<1x100xf32> to vector<8x100xf32>
    %208 = arith.addf %205, %207 : vector<8x100xf32>
    %cst_107 = arith.constant 0.000000e+00 : f32
    %209 = vector.broadcast %cst_107 : f32 to vector<8x100xf32>
    %210 = arith.maximumf %208, %209 : vector<8x100xf32>
    %c0_108 = arith.constant 0 : index
    %c0_109 = arith.constant 0 : index
    %211 = vector.load %arg13[%c0_108, %c0_109] : memref<100x64xf32, #tpu.memory_space<vmem>>, vector<100x64xf32>
    %cst_110 = arith.constant dense<0.000000e+00> : vector<8x64xf32>
    %212 = tpu.matmul %210, %211, %cst_110 {dimension_numbers = #tpu.dot_dimension_numbers<[1], [0], [0], [1], [0, 0, 1, 1], [], []>} : vector<8x100xf32>, vector<100x64xf32>, vector<8x64xf32> -> vector<8x64xf32>
    %c0_111 = arith.constant 0 : index
    %c0_112 = arith.constant 0 : index
    %213 = vector.load %arg14[%c0_111, %c0_112] : memref<1x64xf32, #tpu.memory_space<vmem>>, vector<1x64xf32>
    %214 = vector.broadcast %213 : vector<1x64xf32> to vector<8x64xf32>
    %215 = arith.addf %212, %214 : vector<8x64xf32>
    %cst_113 = arith.constant 0.000000e+00 : f32
    %216 = vector.broadcast %cst_113 : f32 to vector<8x64xf32>
    %217 = arith.maximumf %215, %216 : vector<8x64xf32>
    %c0_114 = arith.constant 0 : index
    %c0_115 = arith.constant 0 : index
    %218 = vector.load %arg15[%c0_114, %c0_115] : memref<1x64xf32, #tpu.memory_space<vmem>>, vector<1x64xf32>
    %219 = vector.broadcast %218 : vector<1x64xf32> to vector<8x64xf32>
    %220 = arith.mulf %217, %219 : vector<8x64xf32>
    %cst_116 = arith.constant dense<0.000000e+00> : vector<8xf32>
    %221 = vector.multi_reduction <add>, %220, %cst_116 [1] : vector<8x64xf32> to vector<8xf32>
    %222 = vector.shape_cast %221 : vector<8xf32> to vector<8x1xf32>
    %c0_117 = arith.constant 0 : index
    %c0_118 = arith.constant 0 : index
    %223 = vector.load %arg16[%c0_117, %c0_118] : memref<1x1xf32, #tpu.memory_space<vmem>>, vector<1x1xf32>
    %224 = vector.broadcast %223 : vector<1x1xf32> to vector<8x1xf32>
    %225 = arith.addf %222, %224 : vector<8x1xf32>
    %226 = arith.negf %225 : vector<8x1xf32>
    %227 = math.exp %226 : vector<8x1xf32>
    %cst_119 = arith.constant 1.000000e+00 : f32
    %228 = vector.broadcast %cst_119 : f32 to vector<8x1xf32>
    %229 = arith.addf %228, %227 : vector<8x1xf32>
    %230 = arith.divf %228, %229 : vector<8x1xf32>
    %cst_120 = arith.constant 0.000000e+00 : f32
    %231 = vector.broadcast %cst_120 : f32 to vector<8x95xf32>
    %232 = tpu.concatenate %203, %230, %231 in 1 : vector<8x32xf32>, vector<8x1xf32>, vector<8x95xf32> -> vector<8x128xf32>
    %c0_121 = arith.constant 0 : index
    %c0_122 = arith.constant 0 : index
    %233 = vector.load %arg17[%c0_121, %c0_122] : memref<8x128xf32, #tpu.memory_space<vmem>>, vector<8x128xf32>
    tpu.vector_store %arg17[%c0_121, %c0_122], %232 {strides = array<i32>} : memref<8x128xf32, #tpu.memory_space<vmem>>, vector<8x128xf32>,
    return
  }
  func.func @transform_0(%arg0: i32) -> (i32, i32, i32, i32) {
    %c0_i32 = arith.constant 0 : i32
    %c0_i32_0 = arith.constant 0 : i32
    %c0_i32_1 = arith.constant 0 : i32
    %c0_i32_2 = arith.constant 0 : i32
    return %arg0, %c0_i32, %c0_i32_0, %c0_i32_1 : i32, i32, i32, i32
  }
  func.func @transform_1(%arg0: i32) -> (i32, i32, i32) {
    %c0_i32 = arith.constant 0 : i32
    %c0_i32_0 = arith.constant 0 : i32
    %c0_i32_1 = arith.constant 0 : i32
    return %arg0, %c0_i32, %c0_i32_0 : i32, i32, i32
  }
  func.func @transform_2(%arg0: i32) -> (i32, i32) {
    %c0_i32 = arith.constant 0 : i32
    %c0_i32_0 = arith.constant 0 : i32
    %c0_i32_1 = arith.constant 0 : i32
    return %c0_i32, %c0_i32_0 : i32, i32
  }
  func.func @transform_3(%arg0: i32) -> (i32, i32) {
    %c0_i32 = arith.constant 0 : i32
    %c0_i32_0 = arith.constant 0 : i32
    %c0_i32_1 = arith.constant 0 : i32
    return %c0_i32, %c0_i32_0 : i32, i32
  }
  func.func @transform_4(%arg0: i32) -> (i32, i32) {
    %c0_i32 = arith.constant 0 : i32
    %c0_i32_0 = arith.constant 0 : i32
    %c0_i32_1 = arith.constant 0 : i32
    return %c0_i32, %c0_i32_0 : i32, i32
  }
  func.func @transform_5(%arg0: i32) -> (i32, i32) {
    %c0_i32 = arith.constant 0 : i32
    %c0_i32_0 = arith.constant 0 : i32
    %c0_i32_1 = arith.constant 0 : i32
    return %c0_i32, %c0_i32_0 : i32, i32
  }
  func.func @transform_6(%arg0: i32) -> (i32, i32) {
    %c0_i32 = arith.constant 0 : i32
    %c0_i32_0 = arith.constant 0 : i32
    %c0_i32_1 = arith.constant 0 : i32
    return %c0_i32, %c0_i32_0 : i32, i32
  }
  func.func @transform_7(%arg0: i32) -> (i32, i32) {
    %c0_i32 = arith.constant 0 : i32
    %c0_i32_0 = arith.constant 0 : i32
    %c0_i32_1 = arith.constant 0 : i32
    return %c0_i32, %c0_i32_0 : i32, i32
  }
  func.func @transform_8(%arg0: i32) -> (i32, i32) {
    %c0_i32 = arith.constant 0 : i32
    %c0_i32_0 = arith.constant 0 : i32
    %c0_i32_1 = arith.constant 0 : i32
    return %c0_i32, %c0_i32_0 : i32, i32
  }
  func.func @transform_9(%arg0: i32) -> (i32, i32) {
    %c0_i32 = arith.constant 0 : i32
    %c0_i32_0 = arith.constant 0 : i32
    %c0_i32_1 = arith.constant 0 : i32
    return %c0_i32, %c0_i32_0 : i32, i32
  }
  func.func @transform_10(%arg0: i32) -> (i32, i32) {
    %c0_i32 = arith.constant 0 : i32
    %c0_i32_0 = arith.constant 0 : i32
    %c0_i32_1 = arith.constant 0 : i32
    return %c0_i32, %c0_i32_0 : i32, i32
  }
  func.func @transform_11(%arg0: i32) -> (i32, i32) {
    %c0_i32 = arith.constant 0 : i32
    %c0_i32_0 = arith.constant 0 : i32
    %c0_i32_1 = arith.constant 0 : i32
    return %c0_i32, %c0_i32_0 : i32, i32
  }
  func.func @transform_12(%arg0: i32) -> (i32, i32) {
    %c0_i32 = arith.constant 0 : i32
    %c0_i32_0 = arith.constant 0 : i32
    %c0_i32_1 = arith.constant 0 : i32
    return %c0_i32, %c0_i32_0 : i32, i32
  }
  func.func @transform_13(%arg0: i32) -> (i32, i32) {
    %c0_i32 = arith.constant 0 : i32
    %c0_i32_0 = arith.constant 0 : i32
    %c0_i32_1 = arith.constant 0 : i32
    return %c0_i32, %c0_i32_0 : i32, i32
  }
  func.func @transform_14(%arg0: i32) -> (i32, i32) {
    %c0_i32 = arith.constant 0 : i32
    %c0_i32_0 = arith.constant 0 : i32
    %c0_i32_1 = arith.constant 0 : i32
    return %c0_i32, %c0_i32_0 : i32, i32
  }
  func.func @transform_15(%arg0: i32) -> (i32, i32) {
    %c0_i32 = arith.constant 0 : i32
    %c0_i32_0 = arith.constant 0 : i32
    %c0_i32_1 = arith.constant 0 : i32
    return %c0_i32, %c0_i32_0 : i32, i32
  }
  func.func @transform_16(%arg0: i32) -> (i32, i32) {
    %c0_i32 = arith.constant 0 : i32
    %c0_i32_0 = arith.constant 0 : i32
    return %arg0, %c0_i32 : i32, i32
  }
}

</mosaic_0001>

<bundles_post_ra>
// kernel: my_graph_model_forward.1
= control target key start
LH: loop header
LB: loop body
LE: loop exit
PB: predicated region body
PF: predicated region fallthrough
CT: control target
= control target key end

     0   :  { %s4848_s25 = smov 0   ;;  %s5733_s0 = inlined_call_operand.vmem [shape: f32[2,4,128,128], index: 0, kind: input, shape index: {}]   ;;  %s5734_s1 = inlined_call_operand.vmem [shape: f32[2,32,128], index: 1, kind: input, shape index: {}]   ;;  %s5735_s2 = inlined_call_operand.vmem [shape: f32[128,32], index: 2, kind: input, shape index: {}]   ;;  %s5736_s3 = inlined_call_operand.vmem [shape: f32[32,1], index: 3, kind: input, shape index: {}]   ;;  %s5737_s4 = inlined_call_operand.vmem [shape: f32[128,32], index: 4, kind: input, shape index: {}]   ;;  %s5738_s5 = inlined_call_operand.vmem [shape: f32[32,1], index: 5, kind: input, shape index: {}]   ;;  %s5739_s6 = inlined_call_operand.vmem [shape: f32[128,32], index: 6, kind: input, shape index: {}]   ;;  %s5740_s7 = inlined_call_operand.vmem [shape: f32[32,1], index: 7, kind: input, shape index: {}]   ;;  %s5741_s8 = inlined_call_operand.vmem [shape: f32[1,32], index: 8, kind: input, shape index: {}]   ;;  %s5742_s9 = inlined_call_operand.<no memory space> [shape: f32[1,1], index: 9, kind: input, shape index: {}]   ;;  %s5743_s10 = inlined_call_operand.vmem [shape: f32[32,100], index: 10, kind: input, shape index: {}]   ;;  %s5744_s11 = inlined_call_operand.vmem [shape: f32[1,100], index: 11, kind: input, shape index: {}]   ;;  %s5745_s12 = inlined_call_operand.vmem [shape: f32[100,64], index: 12, kind: input, shape index: {}]   ;;  %s5746_s13 = inlined_call_operand.vmem [shape: f32[1,64], index: 13, kind: input, shape index: {}]   ;;  %s5747_s14 = inlined_call_operand.vmem [shape: f32[1,64], index: 14, kind: input, shape index: {}]   ;;  %s5748_s16 = inlined_call_operand.vmem [shape: f32[16,128], index: 16, kind: output, shape index: {}]   ;;  %s5749_s15 = inlined_call_operand.<no memory space> [shape: f32[1,1], index: 15, kind: input, shape index: {}]  }
   0x1   :  { %5750 = sst [smem:[#allocation4_spill]] %s5733_s0  ;;  %v21_v0 = vstv %s5742_s9  ;;  %v23_v1 = vstv %s5749_s15 }
   0x2   :  { %22 = vst [vmem:[#allocation2] sm:$0x1] %v21_v0  ;;  %24 = vst [vmem:[#allocation3] sm:$0x1] %v23_v1 }
   0x3 LB: > { %s3178_s26 = sadd.s32 4294967295, %s4750_s25   ;;  %p3182_p0 = scmp.ge.s32.totalorder %s4750_s25, 1  ;;  %s4750_s25 = sphi %s4848_s25, %s30_s25  }
   0x4   : > { %p476_p1 = scmp.lt.s32.totalorder %s4750_s25, 3 }
   0x6   : > { %p477_p2 = pnand %p3182_p0, %p476_p1 }
   0x7   : > { %p530_p3 = scmp.lt.s32.totalorder (!%p477_p2), %s3178_s26, 1  ;;  %v548_v2 = vld [vmem:[%s5735_s2] sm:$0xff] (!%p477_p2)  ;;  %vm564_vm0 = vcmask (!%p477_p2), 261120   ;;  %s5751_s0 = sld [smem:[#allocation4_spill]] (!%p477_p2)  ;;  %v549_v25 = vld [vmem:[%s5735_s2 + $0x8] sm:$0xff] (!%p477_p2)  ;;  %v550_v26 = vld [vmem:[%s5735_s2 + $0x10] sm:$0xff] (!%p477_p2) }
   0x8   : > { %480 = sbr.rel (%p477_p2) target bundleno = 2874 (0xb3a), region = 84  ;;  %3625 = vmatprep.mubr.msk.f32.mxu0 (!%p477_p2), %vm564_vm0, %v548_v2  ;;  %v551_v31 = vld [vmem:[%s5735_s2 + $0x18] sm:$0xff] (!%p477_p2)  ;;  %v552_v32 = vld [vmem:[%s5735_s2 + $0x20] sm:$0xff] (!%p477_p2)  ;;  %v553_v36 = vld [vmem:[%s5735_s2 + $0x28] sm:$0xff] (!%p477_p2)  ;;  %vm2497_vm1 = vcmask (!%p477_p2), 7168   ;;  %vm4754_vm2 = vmmov (!%p477_p2), 0  }
   0x9   : > { %v554_v37 = vld [vmem:[%s5735_s2 + $0x30] sm:$0xff] (!%p477_p2)  ;;  %v555_v41 = vld [vmem:[%s5735_s2 + $0x38] sm:$0xff] (!%p477_p2)  ;;  %v556_v42 = vld [vmem:[%s5735_s2 + $0x40] sm:$0xff] (!%p477_p2)  ;;  %vm2882_vm3 = vcmask (!%p477_p2), 1040384   ;;  %vm2884_vm4 = vcmask (!%p477_p2), 1041408   ;;  %vm2886_vm5 = vcmask (!%p477_p2), 1042432  }
   0xa   : > { %v557_v46 = vld [vmem:[%s5735_s2 + $0x48] sm:$0xff] (!%p477_p2)  ;;  %v558_v47 = vld [vmem:[%s5735_s2 + $0x50] sm:$0xff] (!%p477_p2)  ;;  %v559_v49 = vld [vmem:[%s5735_s2 + $0x58] sm:$0xff] (!%p477_p2)  ;;  %vm2888_vm6 = vcmask (!%p477_p2), 1043456   ;;  %vm2890_vm7 = vcmask (!%p477_p2), 1044480   ;;  %vm2892_vm8 = vcmask (!%p477_p2), 1045504  }
   0xb   : > { %v560_v50 = vld [vmem:[%s5735_s2 + $0x60] sm:$0xff] (!%p477_p2)  ;;  %v561_v51 = vld [vmem:[%s5735_s2 + $0x68] sm:$0xff] (!%p477_p2)  ;;  %v562_v52 = vld [vmem:[%s5735_s2 + $0x70] sm:$0xff] (!%p477_p2)  ;;  %vm2894_vm9 = vcmask (!%p477_p2), 1046528   ;;  %vm3001_vm10 = vcmask (!%p477_p2), 818176   ;;  %vm3087_vm11 = vcmask (!%p477_p2), 523264  }
   0xc   : > { %v563_v53 = vld [vmem:[%s5735_s2 + $0x78] sm:$0xff] (!%p477_p2)  ;;  %vm3110_vm12 = vcmask (!%p477_p2), 269312  }
   0xf   : > { %s5753_s26 = smov (!%p530_p3, %s3178_s26), 1 }
  0x10   : > { %s3296_s27 = sshll.u32 %s5753_s26, 9  ;;  %s3297_s28 = sshll.u32 %s5753_s26, 5 }
  0x11   : > { %s4867_s17 = scalar_lea.vmem %s5751_s0, %s3296_s27  ;;  %s539_s20 = scalar_lea.vmem %s5734_s1, %s3297_s28 }
  0x12   : > { %v544_v3 = vld [vmem:[%s539_s20] sm:$0xff]  ;;  %v545_v4 = vld [vmem:[%s539_s20 + $0x8] sm:$0xff]  ;;  %v546_v5 = vld [vmem:[%s539_s20 + $0x10] sm:$0xff] }
  0x13   : > { %v4209_v6 = vpack.c.bf16 %v545_v4, %v544_v3  ;;  %v547_v7 = vld [vmem:[%s539_s20 + $0x18] sm:$0xff]  ;;  %v758_v8 = vld [vmem:[%s4867_s17] sm:$0xff]  ;;  %v759_v9 = vld [vmem:[%s4867_s17 + $0x8] sm:$0xff]  ;;  %s4756_s20 = smov 32  }
  0x14   : > { %v4213_v10 = vpack.c.bf16 %v547_v7, %v546_v5  ;;  %v4874_v11 = vpack.c.bf16 %v759_v9, %v758_v8  ;;  %v760_v12 = vld [vmem:[%s4867_s17 + $0x10] sm:$0xff]  ;;  %v761_v13 = vld [vmem:[%s4867_s17 + $0x18] sm:$0xff]  ;;  %v762_v15 = vld [vmem:[%s4867_s17 + $0x20] sm:$0xff] }
  0x15   : > { %4210 = vmatprep.subr.bf16.mxu0 %v4209_v6  ;;  %v4878_v14 = vpack.c.bf16 %v761_v13, %v760_v12  ;;  %v763_v16 = vld [vmem:[%s4867_s17 + $0x28] sm:$0xff]  ;;  %v3204_v17 = vld [vmem:[%s4867_s17 + $0x80] sm:$0xff]  ;;  %v3206_v21 = vld [vmem:[%s4867_s17 + $0x90] sm:$0xff] }
  0x16   : > { %4212 = vmatpush3.bf16.msra.mxu0 %v4209_v6  ;;  %4250 = vmatprep.subr.bf16.mxu1 %v4874_v11  ;;  %v3205_v18 = vld [vmem:[%s4867_s17 + $0x88] sm:$0xff]  ;;  %v4887_v19 = vpack.c.bf16 %v763_v16, %v762_v15  ;;  %v764_v22 = vld [vmem:[%s4867_s17 + $0x30] sm:$0xff]  ;;  %v765_v23 = vld [vmem:[%s4867_s17 + $0x38] sm:$0xff]  ;;  %v4752_v15 = vmov 0  }
  0x17   : > { %4214 = vmatprep.subr.bf16.mxu0 %v4213_v10  ;;  %4252 = vmatpush3.bf16.msra.mxu1 %v4874_v11  ;;  %v4889_v20 = vpack.c.bf16 %v3205_v18, %v3204_v17  ;;  %v3207_v24 = vld [vmem:[%s4867_s17 + $0x98] sm:$0xff]  ;;  %v4906_v28 = vpack.c.bf16 %v765_v23, %v764_v22  ;;  %v766_v29 = vld [vmem:[%s4867_s17 + $0x40] sm:$0xff]  ;;  %v767_v30 = vld [vmem:[%s4867_s17 + $0x48] sm:$0xff] }
  0x18   : > { %4254 = vmatprep.subr.bf16.mxu1 %v4878_v14  ;;  %v4903_v27 = vpack.c.bf16 %v3207_v24, %v3206_v21  ;;  %v4922_v33 = vpack.c.bf16 %v767_v30, %v766_v29  ;;  %v768_v34 = vld [vmem:[%s4867_s17 + $0x50] sm:$0xff]  ;;  %v769_v35 = vld [vmem:[%s4867_s17 + $0x58] sm:$0xff]  ;;  %v770_v39 = vld [vmem:[%s4867_s17 + $0x60] sm:$0xff]  ;;  %4690 = vset.pattern.permute.xlu0 %v4752_v15 }
  0x19   : > { %v4937_v38 = vpack.c.bf16 %v769_v35, %v768_v34  ;;  %v771_v40 = vld [vmem:[%s4867_s17 + $0x68] sm:$0xff]  ;;  %v772_v44 = vld [vmem:[%s4867_s17 + $0x70] sm:$0xff]  ;;  %v773_v45 = vld [vmem:[%s4867_s17 + $0x78] sm:$0xff]  ;;  %4691 = vset.pattern.permute.xlu1 %v4752_v15 }
  0x1a   : > { %4216 = vmatpush3.bf16.msra.mxu0 %v4213_v10  ;;  %v4951_v43 = vpack.c.bf16 %v771_v40, %v770_v39  ;;  %v4965_v48 = vpack.c.bf16 %v773_v45, %v772_v44  ;;  %v3208_v54 = vld [vmem:[%s4867_s17 + $0xa0] sm:$0xff]  ;;  %v3209_v55 = vld [vmem:[%s4867_s17 + $0xa8] sm:$0xff]  ;;  %v3210_v60 = vld [vmem:[%s4867_s17 + $0xb0] sm:$0xff] }
  0x1b   : > { %4256 = vmatpush3.bf16.msra.mxu1 %v4878_v14  ;;  %4218 = vmatprep.subr.bf16.mxu0 %v4889_v20  ;;  %v4994_v56 = vpack.c.bf16 %v3209_v55, %v3208_v54  ;;  %v3220_v57 = vld [vmem:[%s4867_s17 + $0x100] sm:$0xff]  ;;  %v3221_v58 = vld [vmem:[%s4867_s17 + $0x108] sm:$0xff]  ;;  %v3211_v61 = vld [vmem:[%s4867_s17 + $0xb8] sm:$0xff] }
  0x1c   : > { %4258 = vmatprep.subr.bf16.mxu1 %v4887_v19  ;;  %v4999_v59 = vpack.c.bf16 %v3221_v58, %v3220_v57  ;;  %v5005_v62 = vpack.c.bf16 %v3211_v61, %v3210_v60  ;;  %v3212_v63 = vld [vmem:[%s4867_s17 + $0xc0] sm:$0xff]  ;;  %v3213_v0 = vld [vmem:[%s4867_s17 + $0xc8] sm:$0xff]  ;;  %v3214_v2 = vld [vmem:[%s4867_s17 + $0xd0] sm:$0xff] }
  0x1d   : > { %3626 = vmatmul.mubr.msk.f32.vlgmr.msra.gmra.mrb[0].mxu0 %vm564_vm0, %v549_v25  ;;  %v5011_v1 = vpack.c.bf16 %v3213_v0, %v3212_v63  ;;  %v3215_v3 = vld [vmem:[%s4867_s17 + $0xd8] sm:$0xff]  ;;  %v3216_v5 = vld [vmem:[%s4867_s17 + $0xe0] sm:$0xff]  ;;  %v3217_v6 = vld [vmem:[%s4867_s17 + $0xe8] sm:$0xff] }
  0x1e   : > { %3628 = vmatprep.mubr.msk.f32.mxu0 %vm564_vm0, %v550_v26  ;;  %4220 = vmatpush3.bf16.msra.mxu0 %v4889_v20  ;;  %v5017_v4 = vpack.c.bf16 %v3215_v3, %v3214_v2  ;;  %v5023_v7 = vpack.c.bf16 %v3217_v6, %v3216_v5  ;;  %v3218_v8 = vld [vmem:[%s4867_s17 + $0xf0] sm:$0xff]  ;;  %v3219_v9 = vld [vmem:[%s4867_s17 + $0xf8] sm:$0xff]  ;;  %v1173_v12 = vld [vmem:[%s5736_s3] sm:$0xff] }
  0x1f   : > { %4260 = vmatpush3.bf16.msra.mxu1 %v4887_v19  ;;  %4222 = vmatprep.subr.bf16.mxu0 %v4903_v27  ;;  %v5029_v10 = vpack.c.bf16 %v3219_v9, %v3218_v8  ;;  %v1175_v13 = vld [vmem:[%s5736_s3 + $0x10] sm:$0xff]  ;;  %v1174_v16 = vld [vmem:[%s5736_s3 + $0x8] sm:$0xff]  ;;  %v1176_v17 = vld [vmem:[%s5736_s3 + $0x18] sm:$0xff] }
  0x20   : > { %4262 = vmatprep.subr.bf16.mxu1 %v4906_v28  ;;  %1179 = vperm.xlu0 %4690, %v1173_v12   ;;  %v1758_v18 = vld [vmem:[%s5738_s5] sm:$0xff]  ;;  %v1759_v21 = vld [vmem:[%s5738_s5 + $0x8] sm:$0xff]  ;;  %v1760_v22 = vld [vmem:[%s5738_s5 + $0x10] sm:$0xff] }
  0x21   : > { %3629 = vmatmul.mubr.msk.f32.gmra.mrb[2].mxu0 %vm564_vm0, %v551_v31  ;;  %1189 = vperm.xlu1 %4691, %v1175_v13   ;;  %v1761_v23 = vld [vmem:[%s5738_s5 + $0x18] sm:$0xff]  ;;  %v2343_v24 = vld [vmem:[%s5740_s7] sm:$0xff]  ;;  %v2344_v25 = vld [vmem:[%s5740_s7 + $0x8] sm:$0xff] }
  0x22   : > { %3631 = vmatprep.mubr.msk.f32.mxu0 %vm564_vm0, %v552_v32  ;;  %4224 = vmatpush3.bf16.msra.mxu0 %v4903_v27  ;;  %v2345_v26 = vld [vmem:[%s5740_s7 + $0x10] sm:$0xff]  ;;  %v2346_v29 = vld [vmem:[%s5740_s7 + $0x18] sm:$0xff]  ;;  %v3232_v61 = vld [vmem:[%s4867_s17 + $0x160] sm:$0xff] }
  0x23   : > { %4264 = vmatpush3.bf16.msra.mxu1 %v4906_v28  ;;  %4226 = vmatprep.subr.bf16.mxu0 %v4994_v56  ;;  %v3222_v30 = vld [vmem:[%s4867_s17 + $0x110] sm:$0xff]  ;;  %v3223_v31 = vld [vmem:[%s4867_s17 + $0x118] sm:$0xff]  ;;  %v3233_v63 = vld [vmem:[%s4867_s17 + $0x168] sm:$0xff] }
  0x24   : > { %4266 = vmatprep.subr.bf16.mxu1 %v4922_v33  ;;  %1184 = vperm.xlu0 %4690, %v1174_v16   ;;  %v5071_v35 = vpack.c.bf16 %v3223_v31, %v3222_v30  ;;  %v3227_v44 = vld [vmem:[%s4867_s17 + $0x138] sm:$0xff]  ;;  %v3230_v54 = vld [vmem:[%s4867_s17 + $0x150] sm:$0xff]  ;;  %v5101_v2 = vpack.c.bf16 %v3233_v63, %v3232_v61  ;;  %v3236_v13 = vld [vmem:[%s4867_s17 + $0x180] sm:$0xff] }
  0x25   : > { %3632 = vmatmul.mubr.msk.f32.gmra.mrb[4].mxu0 %vm564_vm0, %v553_v36  ;;  %1194 = vperm.xlu1 %4691, %v1176_v17   ;;  %v3224_v36 = vld [vmem:[%s4867_s17 + $0x120] sm:$0xff]  ;;  %v3231_v55 = vld [vmem:[%s4867_s17 + $0x158] sm:$0xff]  ;;  %v3234_v5 = vld [vmem:[%s4867_s17 + $0x170] sm:$0xff] }
  0x26   : > { %3634 = vmatprep.mubr.msk.f32.mxu0 %vm564_vm0, %v554_v37  ;;  %4228 = vmatpush3.bf16.msra.mxu0 %v4994_v56  ;;  %v3225_v37 = vld [vmem:[%s4867_s17 + $0x128] sm:$0xff]  ;;  %v5095_v58 = vpack.c.bf16 %v3231_v55, %v3230_v54  ;;  %v3235_v6 = vld [vmem:[%s4867_s17 + $0x178] sm:$0xff] }
  0x27   : > { %4268 = vmatpush3.bf16.msra.mxu1 %v4922_v33  ;;  %4230 = vmatprep.subr.bf16.mxu0 %v5005_v62  ;;  %v5077_v40 = vpack.c.bf16 %v3225_v37, %v3224_v36  ;;  %v5107_v9 = vpack.c.bf16 %v3235_v6, %v3234_v5  ;;  %v3237_v15 = vld [vmem:[%s4867_s17 + $0x188] sm:$0xff]  ;;  %v3243_v30 = vld [vmem:[%s4867_s17 + $0x1b8] sm:$0xff]  ;;  %v3246_v37 = vld [vmem:[%s4867_s17 + $0x1d0] sm:$0xff] }
  0x28   : > { %4270 = vmatprep.subr.bf16.mxu1 %v4937_v38  ;;  %1764 = vperm.xlu0 %4690, %v1758_v18   ;;  %v5113_v17 = vpack.c.bf16 %v3237_v15, %v3236_v13 }
  0x29   : > { %3635 = vmatmul.mubr.msk.f32.gmra.mrb[6].mxu0 %vm564_vm0, %v555_v41  ;;  %1769 = vperm.xlu1 %4691, %v1759_v21   ;;  %v3238_v21 = vld [vmem:[%s4867_s17 + $0x190] sm:$0xff] }
  0x2a   : > { %3637 = vmatprep.mubr.msk.f32.mxu0 %vm564_vm0, %v556_v42  ;;  %4232 = vmatpush3.bf16.msra.mxu0 %v5005_v62  ;;  %v3226_v42 = vld [vmem:[%s4867_s17 + $0x130] sm:$0xff] }
  0x2b   : > { %4272 = vmatpush3.bf16.msra.mxu1 %v4937_v38  ;;  %4234 = vmatprep.subr.bf16.mxu0 %v5011_v1 }
  0x2c   : > { %4274 = vmatprep.subr.bf16.mxu1 %v4951_v43  ;;  %1774 = vperm.xlu0 %4690, %v1760_v22   ;;  %v3239_v22 = vld [vmem:[%s4867_s17 + $0x198] sm:$0xff] }
  0x2d   : > { %3638 = vmatmul.mubr.msk.f32.gmra.mrb[8].mxu0 %vm564_vm0, %v557_v46  ;;  %1779 = vperm.xlu1 %4691, %v1761_v23   ;;  %v5083_v46 = vpack.c.bf16 %v3227_v44, %v3226_v42  ;;  %v5119_v23 = vpack.c.bf16 %v3239_v22, %v3238_v21  ;;  %v3248_v42 = vld [vmem:[%s4867_s17 + $0x1e0] sm:$0xff]  ;;  %v3249_v44 = vld [vmem:[%s4867_s17 + $0x1e8] sm:$0xff] }
  0x2e   : > { %3640 = vmatprep.mubr.msk.f32.mxu0 %vm564_vm0, %v558_v47  ;;  %4236 = vmatpush3.bf16.msra.mxu0 %v5011_v1 }
  0x2f   : > { %4276 = vmatpush3.bf16.msra.mxu1 %v4951_v43  ;;  %4238 = vmatprep.subr.bf16.mxu0 %v5017_v4 }
  0x30   : > { %4278 = vmatprep.subr.bf16.mxu1 %v4965_v48  ;;  %2349 = vperm.xlu0 %4690, %v2343_v24   ;;  %v3240_v24 = vld [vmem:[%s4867_s17 + $0x1a0] sm:$0xff] }
  0x31   : > { %3641 = vmatmul.mubr.msk.f32.gmra.mrb[10].mxu0 %vm564_vm0, %v559_v49  ;;  %2354 = vperm.xlu1 %4691, %v2344_v25   ;;  %v3228_v49 = vld [vmem:[%s4867_s17 + $0x140] sm:$0xff]  ;;  %v3241_v25 = vld [vmem:[%s4867_s17 + $0x1a8] sm:$0xff] }
  0x32   : > { %3643 = vmatprep.mubr.msk.f32.mxu0 %vm564_vm0, %v560_v50  ;;  %4240 = vmatpush3.bf16.msra.mxu0 %v5017_v4  ;;  %v3229_v50 = vld [vmem:[%s4867_s17 + $0x148] sm:$0xff] }
  0x33   : > { %4280 = vmatpush3.bf16.msra.mxu1 %v4965_v48  ;;  %4242 = vmatprep.subr.bf16.mxu0 %v5023_v7 }
  0x34   : > { %4282 = vmatprep.subr.bf16.mxu1 %v4999_v59  ;;  %2359 = vperm.xlu0 %4690, %v2345_v26   ;;  %v5125_v26 = vpack.c.bf16 %v3241_v25, %v3240_v24 }
  0x35   : > { %3644 = vmatmul.mubr.msk.f32.gmra.mrb[12].mxu0 %vm564_vm0, %v561_v51  ;;  %2364 = vperm.xlu1 %4691, %v2346_v29   ;;  %v3242_v29 = vld [vmem:[%s4867_s17 + $0x1b0] sm:$0xff] }
  0x36   : > { %3646 = vmatprep.mubr.msk.f32.mxu0 %vm564_vm0, %v562_v52  ;;  %4244 = vmatpush3.bf16.msra.mxu0 %v5023_v7  ;;  %v5089_v52 = vpack.c.bf16 %v3229_v50, %v3228_v49  ;;  %v5131_v31 = vpack.c.bf16 %v3243_v30, %v3242_v29  ;;  %v3251_v49 = vld [vmem:[%s4867_s17 + $0x1f8] sm:$0xff]  ;;  %v1202_v30 = vld [vmem:[%s5737_s4 + $0x8] sm:$0xff] }
  0x37   : > { %4246 = vmatprep.subr.bf16.mxu0 %v5029_v10 }
  0x39   : > { %3647 = vmatmul.mubr.msk.f32.gmra.mrb[14].mxu0 %vm564_vm0, %v563_v53 }
  0x3a   : > { %4248 = vmatpush3.bf16.msra.mxu0 %v5029_v10 }
  0xa0   : > { %v1190_v61 = vpop.permute.xlu1 %1189 }
  0xf0   : > { %v3627_v32 = vpop.f32.mrb[0].mxu0 }
  0xf1   : > { %v679_v34 = vpop.f32.mrb[1].mxu0 }
  0xf2   : > { %3719 = vmatprep.mubr.f32.mxu1 %v679_v34  ;;  %v3245_v34 = vld [vmem:[%s4867_s17 + $0x1c8] sm:$0xff] }
  0xf3   : > { %3720 = vmatmul.mubr.f32.vlgmr.msra.gmra.mrb[0].mxu1 %v3627_v32  ;;  %v3244_v32 = vld [vmem:[%s4867_s17 + $0x1c0] sm:$0xff] }
  0xf4   : > { %4284 = vmatpush3.bf16.msra.mxu1 %v4999_v59  ;;  %v3630_v39 = vpop.f32.mrb[2].mxu0  ;;  %v5137_v36 = vpack.c.bf16 %v3245_v34, %v3244_v32  ;;  %v1203_v32 = vld [vmem:[%s5737_s4 + $0x10] sm:$0xff]  ;;  %v1204_v34 = vld [vmem:[%s5737_s4 + $0x18] sm:$0xff] }
  0xf5   : > { %4286 = vmatprep.subr.bf16.mxu1 %v5071_v35  ;;  %v689_v41 = vpop.f32.mrb[3].mxu0 }
  0xf6   : > { %3722 = vmatprep.mubr.f32.mxu1 %v689_v41 }
  0xf7   : > { %3723 = vmatmul.mubr.f32.gmra.mrb[2].mxu1 %v3630_v39  ;;  %v3247_v39 = vld [vmem:[%s4867_s17 + $0x1d8] sm:$0xff] }
  0xf8   : > { %4288 = vmatpush3.bf16.msra.mxu1 %v5071_v35  ;;  %v3633_v45 = vpop.f32.mrb[4].mxu0  ;;  %v5143_v41 = vpack.c.bf16 %v3247_v39, %v3246_v37  ;;  %v1205_v37 = vld [vmem:[%s5737_s4 + $0x20] sm:$0xff]  ;;  %v1206_v39 = vld [vmem:[%s5737_s4 + $0x28] sm:$0xff] }
  0xf9   : > { %4290 = vmatprep.subr.bf16.mxu1 %v5077_v40  ;;  %v699_v47 = vpop.f32.mrb[5].mxu0 }
  0xfa   : > { %3681 = vmatprep.mubr.f32.mxu0 %v699_v47  ;;  %v3250_v47 = vld [vmem:[%s4867_s17 + $0x1f0] sm:$0xff]  ;;  %s3187_s17 = sshll.u32 %s5753_s26, 3 }
  0xfb   : > { %3682 = vmatmul.mubr.f32.vlgmr.msra.gmra.mrb[16].mxu0 %v3633_v45  ;;  %v5149_v45 = vpack.c.bf16 %v3249_v44, %v3248_v42  ;;  %v5155_v50 = vpack.c.bf16 %v3251_v49, %v3250_v47  ;;  %v1207_v42 = vld [vmem:[%s5737_s4 + $0x30] sm:$0xff]  ;;  %v1208_v44 = vld [vmem:[%s5737_s4 + $0x38] sm:$0xff]  ;;  %v1209_v47 = vld [vmem:[%s5737_s4 + $0x40] sm:$0xff]  ;;  %s543_s23 = scalar_lea.vmem %s5748_s16, %s3187_s17 }
  0xfc   : > { %4292 = vmatpush3.bf16.msra.mxu1 %v5077_v40  ;;  %v3636_v51 = vpop.f32.mrb[6].mxu0  ;;  %v1210_v49 = vld [vmem:[%s5737_s4 + $0x48] sm:$0xff] }
  0xfd   : > { %4294 = vmatprep.subr.bf16.mxu1 %v5083_v46  ;;  %v709_v53 = vpop.f32.mrb[7].mxu0 }
  0xfe   : > { %3684 = vmatprep.mubr.f32.mxu0 %v709_v53 }
  0xff   : > { %3685 = vmatmul.mubr.f32.gmra.mrb[18].mxu0 %v3636_v51  ;;  %v1201_v51 = vld [vmem:[%s5737_s4] sm:$0xff] }
 0x100   : > { %4296 = vmatpush3.bf16.msra.mxu1 %v5083_v46  ;;  %v3639_v57 = vpop.f32.mrb[8].mxu0  ;;  %3809 = vmatprep.mubr.msk.f32.mxu0 %vm564_vm0, %v1201_v51  ;;  %v1211_v51 = vld [vmem:[%s5737_s4 + $0x50] sm:$0xff] }
 0x101   : > { %4298 = vmatprep.subr.bf16.mxu1 %v5089_v52  ;;  %v719_v60 = vpop.f32.mrb[9].mxu0 }
 0x102   : > { %3757 = vmatprep.mubr.f32.mxu1 %v719_v60  ;;  %v1180_v60 = vpop.permute.xlu0 %1179 }
 0x104   : > { %4300 = vmatpush3.bf16.msra.mxu1 %v5089_v52  ;;  %v3642_v0 = vpop.f32.mrb[10].mxu0 }
 0x105   : > { %4302 = vmatprep.subr.bf16.mxu1 %v5095_v58  ;;  %v729_v3 = vpop.f32.mrb[11].mxu0 }
 0x106   : > { %v1185_v5 = vpop.permute.xlu0 %1184 }
 0x108   : > { %4304 = vmatpush3.bf16.msra.mxu1 %v5095_v58  ;;  %v3645_v8 = vpop.f32.mrb[12].mxu0 }
 0x109   : > { %4306 = vmatprep.subr.bf16.mxu1 %v5101_v2  ;;  %v739_v12 = vpop.f32.mrb[13].mxu0 }
 0x10c   : > { %4308 = vmatpush3.bf16.msra.mxu1 %v5101_v2  ;;  %v3648_v16 = vpop.f32.mrb[14].mxu0 }
 0x10d   : > { %4310 = vmatprep.subr.bf16.mxu1 %v5107_v9  ;;  %v749_v18 = vpop.f32.mrb[15].mxu0 }
 0x110   : > { %4312 = vmatpush3.bf16.msra.mxu1 %v5107_v9 }
 0x111   : > { %4314 = vmatprep.subr.bf16.mxu1 %v5113_v17 }
 0x113   : > { %3758 = vmatmul.mubr.f32.vlgmr.msra.gmra.mrb[0].mxu1 %v3639_v57 }
 0x114   : > { %4316 = vmatpush3.bf16.msra.mxu1 %v5113_v17  ;;  %3760 = vmatprep.mubr.f32.mxu1 %v729_v3 }
 0x115   : > { %4318 = vmatprep.subr.bf16.mxu1 %v5119_v23 }
 0x117   : > { %3761 = vmatmul.mubr.f32.gmra.mrb[2].mxu1 %v3642_v0 }
 0x118   : > { %4320 = vmatpush3.bf16.msra.mxu1 %v5119_v23  ;;  %3795 = vmatprep.mubr.f32.mxu1 %v739_v12 }
 0x119   : > { %4322 = vmatprep.subr.bf16.mxu1 %v5125_v26 }
 0x11c   : > { %4324 = vmatpush3.bf16.msra.mxu1 %v5125_v26 }
 0x11d   : > { %4326 = vmatprep.subr.bf16.mxu1 %v5131_v31 }
 0x120   : > { %4328 = vmatpush3.bf16.msra.mxu1 %v5131_v31 }
 0x121   : > { %4330 = vmatprep.subr.bf16.mxu1 %v5137_v36 }
 0x124   : > { %4332 = vmatpush3.bf16.msra.mxu1 %v5137_v36 }
 0x125   : > { %4334 = vmatprep.subr.bf16.mxu1 %v5143_v41 }
 0x128   : > { %4336 = vmatpush3.bf16.msra.mxu1 %v5143_v41 }
 0x129   : > { %4338 = vmatprep.subr.bf16.mxu1 %v5149_v45 }
 0x12c   : > { %4340 = vmatpush3.bf16.msra.mxu1 %v5149_v45 }
 0x12d   : > { %4342 = vmatprep.subr.bf16.mxu1 %v5155_v50 }
 0x130   : > { %4344 = vmatpush3.bf16.msra.mxu1 %v5155_v50 }
 0x133   : > { %3796 = vmatmul.mubr.f32.vlgmr.msra.gmra.mrb[0].mxu1 %v3645_v8 }
 0x134   : > { %3798 = vmatprep.mubr.f32.mxu1 %v749_v18  ;;  %v1195_v18 = vpop.permute.xlu1 %1194 }
 0x137   : > { %3799 = vmatmul.mubr.f32.gmra.mrb[2].mxu1 %v3648_v16 }
 0x1ce   : > { %v3683_v53 = vpop.f32.mrb[16].mxu0 }
 0x1cf   : > { %v857_v54 = vpop.f32.mrb[17].mxu0 }
 0x1d2   : > { %v3686_v55 = vpop.f32.mrb[18].mxu0 }
 0x1d3   : > { %v867_v57 = vpop.f32.mrb[19].mxu0 }
 0x206   : > { %v3797_v63 = vpop.f32.mrb[0].mxu1 }
 0x207   : > { %v4641_v0 = vadd.f32 %v3797_v63, %v3683_v53  ;;  %v1150_v3 = vpop.f32.mrb[1].mxu1  ;;  %v1212_v53 = vld [vmem:[%s5737_s4 + $0x58] sm:$0xff] }
 0x208   : > { %v4642_v6 = vadd.f32 %v1150_v3, %v857_v54  ;;  %v1213_v54 = vld [vmem:[%s5737_s4 + $0x60] sm:$0xff] }
 0x209   : > { %v1198_v8 = vadd.f32 %v4641_v0, %v1185_v5 }
 0x20a   : > { %v1197_v12 = vadd.f32 %v4642_v6, %v1180_v60  ;;  %v3800_v13 = vpop.f32.mrb[2].mxu1  ;;  %v1216_v60 = vld [vmem:[%s5737_s4 + $0x78] sm:$0xff] }
 0x20b   : > { %v4643_v15 = vadd.f32 %v3800_v13, %v3686_v55  ;;  %v1160_v16 = vpop.f32.mrb[3].mxu1  ;;  %v1214_v55 = vld [vmem:[%s5737_s4 + $0x68] sm:$0xff] }
 0x20c   : > { %v4644_v21 = vadd.f32 %v1160_v16, %v867_v57  ;;  %v4345_v22 = vpack.c.bf16 %v1198_v8, %v1197_v12  ;;  %v1215_v57 = vld [vmem:[%s5737_s4 + $0x70] sm:$0xff] }
 0x20d   : > { %v1200_v24 = vadd.f32 %v4643_v15, %v1195_v18 }
 0x20e   : > { %v1199_v25 = vadd.f32 %v4644_v21, %v1190_v61  ;;  %4346 = vmatprep.subr.bf16.mxu0 %v4345_v22 }
 0x20f   : > { %4348 = vmatpush3.bf16.msra.mxu0 %v4345_v22 }
 0x210   : > { %v4349_v29 = vpack.c.bf16 %v1200_v24, %v1199_v25 }
 0x212   : > { %4350 = vmatprep.subr.bf16.mxu0 %v4349_v29 }
 0x213   : > { %4352 = vmatpush3.bf16.msra.mxu0 %v4349_v29  ;;  %v1786_v29 = vld [vmem:[%s5739_s6] sm:$0xff] }
 0x214   : > { %4354 = vmatprep.subr.bf16.mxu0 %v4889_v20  ;;  %3993 = vmatprep.mubr.msk.f32.mxu1 %vm564_vm0, %v1786_v29 }
 0x216   : > { %3810 = vmatmul.mubr.msk.f32.vlgmr.msra.gmra.mrb[20].mxu0 %vm564_vm0, %v1202_v30  ;;  %v1770_v30 = vpop.permute.xlu1 %1769 }
 0x217   : > { %3812 = vmatprep.mubr.msk.f32.mxu0 %vm564_vm0, %v1203_v32  ;;  %4356 = vmatpush3.bf16.msra.mxu0 %v4889_v20  ;;  %v1765_v32 = vpop.permute.xlu0 %1764 }
 0x218   : > { %4358 = vmatprep.subr.bf16.mxu0 %v4903_v27 }
 0x21a   : > { %3813 = vmatmul.mubr.msk.f32.gmra.mrb[22].mxu0 %vm564_vm0, %v1204_v34 }
 0x21b   : > { %3815 = vmatprep.mubr.msk.f32.mxu0 %vm564_vm0, %v1205_v37  ;;  %4360 = vmatpush3.bf16.msra.mxu0 %v4903_v27 }
 0x21c   : > { %4362 = vmatprep.subr.bf16.mxu0 %v4994_v56 }
 0x21e   : > { %3816 = vmatmul.mubr.msk.f32.gmra.mrb[24].mxu0 %vm564_vm0, %v1206_v39 }
 0x21f   : > { %3818 = vmatprep.mubr.msk.f32.mxu0 %vm564_vm0, %v1207_v42  ;;  %4364 = vmatpush3.bf16.msra.mxu0 %v4994_v56 }
 0x220   : > { %4366 = vmatprep.subr.bf16.mxu0 %v5005_v62 }
 0x222   : > { %3819 = vmatmul.mubr.msk.f32.gmra.mrb[26].mxu0 %vm564_vm0, %v1208_v44  ;;  %v1780_v44 = vpop.permute.xlu1 %1779 }
 0x223   : > { %3821 = vmatprep.mubr.msk.f32.mxu0 %vm564_vm0, %v1209_v47  ;;  %4368 = vmatpush3.bf16.msra.mxu0 %v5005_v62 }
 0x224   : > { %4370 = vmatprep.subr.bf16.mxu0 %v5011_v1 }
 0x226   : > { %3822 = vmatmul.mubr.msk.f32.gmra.mrb[28].mxu0 %vm564_vm0, %v1210_v49 }
 0x227   : > { %3824 = vmatprep.mubr.msk.f32.mxu0 %vm564_vm0, %v1211_v51  ;;  %4372 = vmatpush3.bf16.msra.mxu0 %v5011_v1  ;;  %v1775_v51 = vpop.permute.xlu0 %1774 }
 0x228   : > { %4374 = vmatprep.subr.bf16.mxu0 %v5017_v4 }
 0x22a   : > { %3825 = vmatmul.mubr.msk.f32.gmra.mrb[30].mxu0 %vm564_vm0, %v1212_v53 }
 0x22b   : > { %3827 = vmatprep.mubr.msk.f32.mxu0 %vm564_vm0, %v1213_v54  ;;  %4376 = vmatpush3.bf16.msra.mxu0 %v5017_v4 }
 0x22c   : > { %4378 = vmatprep.subr.bf16.mxu0 %v5023_v7 }
 0x22e   : > { %3828 = vmatmul.mubr.msk.f32.gmra.mrb[32].mxu0 %vm564_vm0, %v1214_v55 }
 0x22f   : > { %3830 = vmatprep.mubr.msk.f32.mxu0 %vm564_vm0, %v1215_v57  ;;  %4380 = vmatpush3.bf16.msra.mxu0 %v5023_v7 }
 0x230   : > { %4382 = vmatprep.subr.bf16.mxu0 %v5029_v10 }
 0x232   : > { %3831 = vmatmul.mubr.msk.f32.gmra.mrb[34].mxu0 %vm564_vm0, %v1216_v60  ;;  %v1787_v60 = vld [vmem:[%s5739_s6 + $0x8] sm:$0xff] }
 0x233   : > { %4384 = vmatpush3.bf16.msra.mxu0 %v5029_v10 }
 0x234   : > { %4386 = vmatprep.subr.bf16.mxu0 %v4874_v11 }
 0x2e9   : > { %v3811_v61 = vpop.f32.mrb[20].mxu0 }
 0x2ea   : > { %v1331_v63 = vpop.f32.mrb[21].mxu0 }
 0x2ed   : > { %v3814_v0 = vpop.f32.mrb[22].mxu0 }
 0x2ee   : > { %v1341_v3 = vpop.f32.mrb[23].mxu0 }
 0x2f1   : > { %v3817_v5 = vpop.f32.mrb[24].mxu0 }
 0x2f2   : > { %v1351_v6 = vpop.f32.mrb[25].mxu0 }
 0x2f3   : > { %3865 = vmatprep.mubr.f32.mxu0 %v1351_v6  ;;  %v1795_v6 = vld [vmem:[%s5739_s6 + $0x48] sm:$0xff] }
 0x2f4   : > { %3866 = vmatmul.mubr.f32.vlgmr.msra.gmra.mrb[36].mxu0 %v3817_v5  ;;  %v1793_v5 = vld [vmem:[%s5739_s6 + $0x38] sm:$0xff] }
 0x2f5   : > { %4388 = vmatpush3.bf16.msra.mxu0 %v4874_v11  ;;  %v3820_v8 = vpop.f32.mrb[26].mxu0 }
 0x2f6   : > { %v1361_v12 = vpop.f32.mrb[27].mxu0  ;;  %4390 = vmatprep.subr.bf16.mxu0 %v4878_v14 }
 0x2f7   : > { %3868 = vmatprep.mubr.f32.mxu0 %v1361_v12  ;;  %v1799_v12 = vld [vmem:[%s5739_s6 + $0x68] sm:$0xff] }
 0x2f8   : > { %3869 = vmatmul.mubr.f32.gmra.mrb[38].mxu0 %v3820_v8  ;;  %v1797_v8 = vld [vmem:[%s5739_s6 + $0x58] sm:$0xff] }
 0x2f9   : > { %4392 = vmatpush3.bf16.msra.mxu0 %v4878_v14  ;;  %3903 = vmatprep.mubr.f32.mxu0 %v1331_v63  ;;  %v3823_v13 = vpop.f32.mrb[28].mxu0  ;;  %v1789_v63 = vld [vmem:[%s5739_s6 + $0x18] sm:$0xff] }
 0x2fa   : > { %4394 = vmatprep.subr.bf16.mxu0 %v4887_v19  ;;  %v1371_v15 = vpop.f32.mrb[29].mxu0 }
 0x2fd   : > { %4396 = vmatpush3.bf16.msra.mxu0 %v4887_v19  ;;  %v3826_v16 = vpop.f32.mrb[30].mxu0 }
 0x2fe   : > { %4398 = vmatprep.subr.bf16.mxu0 %v4906_v28  ;;  %v1381_v18 = vpop.f32.mrb[31].mxu0 }
 0x301   : > { %4400 = vmatpush3.bf16.msra.mxu0 %v4906_v28  ;;  %v3829_v21 = vpop.f32.mrb[32].mxu0 }
 0x302   : > { %4402 = vmatprep.subr.bf16.mxu0 %v4922_v33  ;;  %v1391_v22 = vpop.f32.mrb[33].mxu0 }
 0x305   : > { %4404 = vmatpush3.bf16.msra.mxu0 %v4922_v33  ;;  %v3832_v24 = vpop.f32.mrb[34].mxu0 }
 0x306   : > { %4406 = vmatprep.subr.bf16.mxu0 %v4937_v38  ;;  %v1401_v25 = vpop.f32.mrb[35].mxu0 }
 0x309   : > { %4408 = vmatpush3.bf16.msra.mxu0 %v4937_v38 }
 0x30a   : > { %4410 = vmatprep.subr.bf16.mxu0 %v4951_v43 }
 0x30d   : > { %4412 = vmatpush3.bf16.msra.mxu0 %v4951_v43 }
 0x30e   : > { %4414 = vmatprep.subr.bf16.mxu0 %v4965_v48 }
 0x311   : > { %4416 = vmatpush3.bf16.msra.mxu0 %v4965_v48 }
 0x312   : > { %4418 = vmatprep.subr.bf16.mxu0 %v4999_v59 }
 0x314   : > { %3904 = vmatmul.mubr.f32.vlgmr.msra.gmra.mrb[36].mxu0 %v3811_v61  ;;  %v1788_v61 = vld [vmem:[%s5739_s6 + $0x10] sm:$0xff] }
 0x315   : > { %3906 = vmatprep.mubr.f32.mxu0 %v1341_v3  ;;  %4420 = vmatpush3.bf16.msra.mxu0 %v4999_v59  ;;  %v1791_v3 = vld [vmem:[%s5739_s6 + $0x28] sm:$0xff] }
 0x316   : > { %4422 = vmatprep.subr.bf16.mxu0 %v5071_v35 }
 0x318   : > { %3907 = vmatmul.mubr.f32.gmra.mrb[38].mxu0 %v3814_v0  ;;  %v1790_v0 = vld [vmem:[%s5739_s6 + $0x20] sm:$0xff] }
 0x319   : > { %4424 = vmatpush3.bf16.msra.mxu0 %v5071_v35  ;;  %3941 = vmatprep.mubr.f32.mxu0 %v1371_v15 }
 0x31a   : > { %4426 = vmatprep.subr.bf16.mxu0 %v5077_v40 }
 0x31d   : > { %4428 = vmatpush3.bf16.msra.mxu0 %v5077_v40 }
 0x31e   : > { %4430 = vmatprep.subr.bf16.mxu0 %v5083_v46 }
 0x321   : > { %4432 = vmatpush3.bf16.msra.mxu0 %v5083_v46 }
 0x322   : > { %4434 = vmatprep.subr.bf16.mxu0 %v5089_v52 }
 0x325   : > { %4436 = vmatpush3.bf16.msra.mxu0 %v5089_v52 }
 0x326   : > { %4438 = vmatprep.subr.bf16.mxu0 %v5095_v58 }
 0x329   : > { %4440 = vmatpush3.bf16.msra.mxu0 %v5095_v58 }
 0x32a   : > { %4442 = vmatprep.subr.bf16.mxu0 %v5101_v2 }
 0x32d   : > { %4444 = vmatpush3.bf16.msra.mxu0 %v5101_v2 }
 0x32e   : > { %4446 = vmatprep.subr.bf16.mxu0 %v5107_v9 }
 0x331   : > { %4448 = vmatpush3.bf16.msra.mxu0 %v5107_v9 }
 0x332   : > { %4450 = vmatprep.subr.bf16.mxu0 %v5113_v17 }
 0x334   : > { %3942 = vmatmul.mubr.f32.vlgmr.msra.gmra.mrb[36].mxu0 %v3823_v13  ;;  %v1801_v13 = vld [vmem:[%s5739_s6 + $0x78] sm:$0xff] }
 0x335   : > { %4452 = vmatpush3.bf16.msra.mxu0 %v5113_v17  ;;  %3944 = vmatprep.mubr.f32.mxu0 %v1381_v18 }
 0x336   : > { %4454 = vmatprep.subr.bf16.mxu0 %v5119_v23 }
 0x338   : > { %3945 = vmatmul.mubr.f32.gmra.mrb[38].mxu0 %v3826_v16 }
 0x339   : > { %4456 = vmatpush3.bf16.msra.mxu0 %v5119_v23  ;;  %3979 = vmatprep.mubr.f32.mxu0 %v1391_v22 }
 0x33a   : > { %4458 = vmatprep.subr.bf16.mxu0 %v5125_v26 }
 0x33d   : > { %4460 = vmatpush3.bf16.msra.mxu0 %v5125_v26 }
 0x33e   : > { %4462 = vmatprep.subr.bf16.mxu0 %v5131_v31 }
 0x341   : > { %4464 = vmatpush3.bf16.msra.mxu0 %v5131_v31 }
 0x342   : > { %4466 = vmatprep.subr.bf16.mxu0 %v5137_v36 }
 0x345   : > { %4468 = vmatpush3.bf16.msra.mxu0 %v5137_v36 }
 0x346   : > { %4470 = vmatprep.subr.bf16.mxu0 %v5143_v41 }
 0x349   : > { %4472 = vmatpush3.bf16.msra.mxu0 %v5143_v41 }
 0x34a   : > { %4474 = vmatprep.subr.bf16.mxu0 %v5149_v45 }
 0x34d   : > { %4476 = vmatpush3.bf16.msra.mxu0 %v5149_v45 }
 0x34e   : > { %4478 = vmatprep.subr.bf16.mxu0 %v5155_v50 }
 0x351   : > { %4480 = vmatpush3.bf16.msra.mxu0 %v5155_v50 }
 0x354   : > { %3980 = vmatmul.mubr.f32.vlgmr.msra.gmra.mrb[36].mxu0 %v3829_v21 }
 0x355   : > { %3982 = vmatprep.mubr.f32.mxu0 %v1401_v25 }
 0x358   : > { %3983 = vmatmul.mubr.f32.gmra.mrb[38].mxu0 %v3832_v24 }
 0x427   : > { %v3981_v34 = vpop.f32.mrb[36].mxu0 }
 0x428   : > { %v1783_v37 = vadd.f32 %v3981_v34, %v1770_v30  ;;  %v1735_v39 = vpop.f32.mrb[37].mxu0 }
 0x429   : > { %v1782_v42 = vadd.f32 %v1765_v32, %v1735_v39 }
 0x42b   : > { %v4481_v47 = vpack.c.bf16 %v1783_v37, %v1782_v42  ;;  %v3984_v49 = vpop.f32.mrb[38].mxu0 }
 0x42c   : > { %v1785_v53 = vadd.f32 %v3984_v49, %v1780_v44  ;;  %v1745_v54 = vpop.f32.mrb[39].mxu0 }
 0x42d   : > { %v1784_v55 = vadd.f32 %v1775_v51, %v1745_v54  ;;  %4482 = vmatprep.subr.bf16.mxu1 %v4481_v47 }
 0x42e   : > { %4484 = vmatpush3.bf16.msra.mxu1 %v4481_v47 }
 0x42f   : > { %v4485_v57 = vpack.c.bf16 %v1785_v53, %v1784_v55 }
 0x431   : > { %4486 = vmatprep.subr.bf16.mxu1 %v4485_v57 }
 0x432   : > { %4488 = vmatpush3.bf16.msra.mxu1 %v4485_v57 }
 0x433   : > { %4490 = vmatprep.subr.bf16.mxu1 %v4889_v20 }
 0x435   : > { %3994 = vmatmul.mubr.msk.f32.vlgmr.msra.gmra.mrb[4].mxu1 %vm564_vm0, %v1787_v60 }
 0x436   : > { %3996 = vmatprep.mubr.msk.f32.mxu1 %vm564_vm0, %v1788_v61  ;;  %4492 = vmatpush3.bf16.msra.mxu1 %v4889_v20  ;;  %v1792_v20 = vld [vmem:[%s5739_s6 + $0x30] sm:$0xff] }
 0x437   : > { %4494 = vmatprep.subr.bf16.mxu1 %v4903_v27 }
 0x439   : > { %3997 = vmatmul.mubr.msk.f32.gmra.mrb[6].mxu1 %vm564_vm0, %v1789_v63 }
 0x43a   : > { %3999 = vmatprep.mubr.msk.f32.mxu1 %vm564_vm0, %v1790_v0  ;;  %4496 = vmatpush3.bf16.msra.mxu1 %v4903_v27  ;;  %v1794_v27 = vld [vmem:[%s5739_s6 + $0x40] sm:$0xff] }
 0x43b   : > { %4498 = vmatprep.subr.bf16.mxu1 %v4994_v56 }
 0x43d   : > { %4000 = vmatmul.mubr.msk.f32.gmra.mrb[8].mxu1 %vm564_vm0, %v1791_v3 }
 0x43e   : > { %4002 = vmatprep.mubr.msk.f32.mxu1 %vm564_vm0, %v1792_v20  ;;  %4500 = vmatpush3.bf16.msra.mxu1 %v4994_v56  ;;  %v1796_v56 = vld [vmem:[%s5739_s6 + $0x50] sm:$0xff] }
 0x43f   : > { %4502 = vmatprep.subr.bf16.mxu1 %v5005_v62 }
 0x441   : > { %4003 = vmatmul.mubr.msk.f32.gmra.mrb[10].mxu1 %vm564_vm0, %v1793_v5 }
 0x442   : > { %4005 = vmatprep.mubr.msk.f32.mxu1 %vm564_vm0, %v1794_v27  ;;  %4504 = vmatpush3.bf16.msra.mxu1 %v5005_v62  ;;  %v1798_v62 = vld [vmem:[%s5739_s6 + $0x60] sm:$0xff] }
 0x443   : > { %4506 = vmatprep.subr.bf16.mxu1 %v5011_v1 }
 0x445   : > { %4006 = vmatmul.mubr.msk.f32.gmra.mrb[12].mxu1 %vm564_vm0, %v1795_v6 }
 0x446   : > { %4008 = vmatprep.mubr.msk.f32.mxu1 %vm564_vm0, %v1796_v56  ;;  %4508 = vmatpush3.bf16.msra.mxu1 %v5011_v1  ;;  %v1800_v1 = vld [vmem:[%s5739_s6 + $0x70] sm:$0xff] }
 0x447   : > { %4510 = vmatprep.subr.bf16.mxu1 %v5017_v4 }
 0x449   : > { %4009 = vmatmul.mubr.msk.f32.gmra.mrb[14].mxu1 %vm564_vm0, %v1797_v8 }
 0x44a   : > { %4011 = vmatprep.mubr.msk.f32.mxu1 %vm564_vm0, %v1798_v62  ;;  %4512 = vmatpush3.bf16.msra.mxu1 %v5017_v4 }
 0x44b   : > { %4514 = vmatprep.subr.bf16.mxu1 %v5023_v7 }
 0x44d   : > { %4012 = vmatmul.mubr.msk.f32.gmra.mrb[16].mxu1 %vm564_vm0, %v1799_v12 }
 0x44e   : > { %4014 = vmatprep.mubr.msk.f32.mxu1 %vm564_vm0, %v1800_v1  ;;  %4516 = vmatpush3.bf16.msra.mxu1 %v5023_v7 }
 0x44f   : > { %4518 = vmatprep.subr.bf16.mxu1 %v5029_v10 }
 0x451   : > { %4015 = vmatmul.mubr.msk.f32.gmra.mrb[18].mxu1 %vm564_vm0, %v1801_v13 }
 0x452   : > { %4520 = vmatpush3.bf16.msra.mxu1 %v5029_v10 }
 0x453   : > { %4522 = vmatprep.subr.bf16.mxu1 %v4874_v11 }
 0x508   : > { %v3995_v4 = vpop.f32.mrb[4].mxu1 }
 0x509   : > { %v1916_v15 = vpop.f32.mrb[5].mxu1 }
 0x50c   : > { %v3998_v16 = vpop.f32.mrb[6].mxu1 }
 0x50d   : > { %v1926_v18 = vpop.f32.mrb[7].mxu1 }
 0x510   : > { %v4001_v21 = vpop.f32.mrb[8].mxu1 }
 0x511   : > { %v1936_v22 = vpop.f32.mrb[9].mxu1 }
 0x512   : > { %4049 = vmatprep.mubr.f32.mxu1 %v1936_v22 }
 0x513   : > { %4050 = vmatmul.mubr.f32.vlgmr.msra.gmra.mrb[20].mxu1 %v4001_v21 }
 0x514   : > { %4524 = vmatpush3.bf16.msra.mxu1 %v4874_v11  ;;  %v4004_v24 = vpop.f32.mrb[10].mxu1 }
 0x515   : > { %v1946_v7 = vpop.f32.mrb[11].mxu1  ;;  %4526 = vmatprep.subr.bf16.mxu1 %v4878_v14 }
 0x516   : > { %4052 = vmatprep.mubr.f32.mxu1 %v1946_v7 }
 0x517   : > { %4053 = vmatmul.mubr.f32.gmra.mrb[22].mxu1 %v4004_v24 }
 0x518   : > { %4528 = vmatpush3.bf16.msra.mxu1 %v4878_v14  ;;  %4087 = vmatprep.mubr.f32.mxu1 %v1916_v15  ;;  %v4007_v10 = vpop.f32.mrb[12].mxu1 }
 0x519   : > { %4530 = vmatprep.subr.bf16.mxu1 %v4887_v19  ;;  %v1956_v25 = vpop.f32.mrb[13].mxu1 }
 0x51c   : > { %4532 = vmatpush3.bf16.msra.mxu1 %v4887_v19  ;;  %v4010_v29 = vpop.f32.mrb[14].mxu1 }
 0x51d   : > { %4534 = vmatprep.subr.bf16.mxu1 %v4906_v28  ;;  %v1966_v30 = vpop.f32.mrb[15].mxu1 }
 0x520   : > { %4536 = vmatpush3.bf16.msra.mxu1 %v4906_v28  ;;  %v4013_v11 = vpop.f32.mrb[16].mxu1  ;;  %v2350_v28 = vpop.permute.xlu0 %2349 }
 0x521   : > { %4538 = vmatprep.subr.bf16.mxu1 %v4922_v33  ;;  %v1976_v32 = vpop.f32.mrb[17].mxu1 }
 0x524   : > { %4540 = vmatpush3.bf16.msra.mxu1 %v4922_v33  ;;  %v4016_v14 = vpop.f32.mrb[18].mxu1 }
 0x525   : > { %4542 = vmatprep.subr.bf16.mxu1 %v4937_v38  ;;  %v1986_v34 = vpop.f32.mrb[19].mxu1 }
 0x528   : > { %4544 = vmatpush3.bf16.msra.mxu1 %v4937_v38 }
 0x529   : > { %4546 = vmatprep.subr.bf16.mxu1 %v4951_v43 }
 0x52c   : > { %4548 = vmatpush3.bf16.msra.mxu1 %v4951_v43 }
 0x52d   : > { %4550 = vmatprep.subr.bf16.mxu1 %v4965_v48 }
 0x530   : > { %4552 = vmatpush3.bf16.msra.mxu1 %v4965_v48  ;;  %v2355_v48 = vpop.permute.xlu1 %2354 }
 0x531   : > { %4554 = vmatprep.subr.bf16.mxu1 %v4999_v59 }
 0x533   : > { %4088 = vmatmul.mubr.f32.vlgmr.msra.gmra.mrb[20].mxu1 %v3995_v4 }
 0x534   : > { %4090 = vmatprep.mubr.f32.mxu1 %v1926_v18  ;;  %4556 = vmatpush3.bf16.msra.mxu1 %v4999_v59 }
 0x535   : > { %4558 = vmatprep.subr.bf16.mxu1 %v5071_v35 }
 0x537   : > { %4091 = vmatmul.mubr.f32.gmra.mrb[22].mxu1 %v3998_v16 }
 0x538   : > { %4560 = vmatpush3.bf16.msra.mxu1 %v5071_v35  ;;  %4125 = vmatprep.mubr.f32.mxu1 %v1956_v25 }
 0x539   : > { %4562 = vmatprep.subr.bf16.mxu1 %v5077_v40 }
 0x53c   : > { %4564 = vmatpush3.bf16.msra.mxu1 %v5077_v40  ;;  %v2360_v40 = vpop.permute.xlu0 %2359 }
 0x53d   : > { %4566 = vmatprep.subr.bf16.mxu1 %v5083_v46 }
 0x540   : > { %4568 = vmatpush3.bf16.msra.mxu1 %v5083_v46 }
 0x541   : > { %4570 = vmatprep.subr.bf16.mxu1 %v5089_v52 }
 0x544   : > { %4572 = vmatpush3.bf16.msra.mxu1 %v5089_v52  ;;  %v2365_v52 = vpop.permute.xlu1 %2364 }
 0x545   : > { %4574 = vmatprep.subr.bf16.mxu1 %v5095_v58 }
 0x548   : > { %4576 = vmatpush3.bf16.msra.mxu1 %v5095_v58 }
 0x549   : > { %4578 = vmatprep.subr.bf16.mxu1 %v5101_v2 }
 0x54c   : > { %4580 = vmatpush3.bf16.msra.mxu1 %v5101_v2  ;;  %v3284_v2 = vld [vmem:[%s5741_s8] ss:$0 sm:$0xff] }
 0x54d   : > { %4582 = vmatprep.subr.bf16.mxu1 %v5107_v9 }
 0x550   : > { %4584 = vmatpush3.bf16.msra.mxu1 %v5107_v9 }
 0x551   : > { %4586 = vmatprep.subr.bf16.mxu1 %v5113_v17 }
 0x553   : > { %4126 = vmatmul.mubr.f32.vlgmr.msra.gmra.mrb[20].mxu1 %v4007_v10 }
 0x554   : > { %4588 = vmatpush3.bf16.msra.mxu1 %v5113_v17  ;;  %4128 = vmatprep.mubr.f32.mxu1 %v1966_v30 }
 0x555   : > { %4590 = vmatprep.subr.bf16.mxu1 %v5119_v23 }
 0x557   : > { %4129 = vmatmul.mubr.f32.gmra.mrb[22].mxu1 %v4010_v29 }
 0x558   : > { %4592 = vmatpush3.bf16.msra.mxu1 %v5119_v23  ;;  %4163 = vmatprep.mubr.f32.mxu1 %v1976_v32  ;;  %v5483_v32 = vld [vmem:[#allocation2] ss:$0 sm:$0xff] }
 0x559   : > { %4594 = vmatprep.subr.bf16.mxu1 %v5125_v26 }
 0x55c   : > { %4596 = vmatpush3.bf16.msra.mxu1 %v5125_v26 }
 0x55d   : > { %4598 = vmatprep.subr.bf16.mxu1 %v5131_v31 }
 0x560   : > { %4600 = vmatpush3.bf16.msra.mxu1 %v5131_v31 }
 0x561   : > { %4602 = vmatprep.subr.bf16.mxu1 %v5137_v36 }
 0x564   : > { %4604 = vmatpush3.bf16.msra.mxu1 %v5137_v36 }
 0x565   : > { %4606 = vmatprep.subr.bf16.mxu1 %v5143_v41 }
 0x568   : > { %4608 = vmatpush3.bf16.msra.mxu1 %v5143_v41 }
 0x569   : > { %4610 = vmatprep.subr.bf16.mxu1 %v5149_v45 }
 0x56c   : > { %4612 = vmatpush3.bf16.msra.mxu1 %v5149_v45 }
 0x56d   : > { %4614 = vmatprep.subr.bf16.mxu1 %v5155_v50 }
 0x570   : > { %4616 = vmatpush3.bf16.msra.mxu1 %v5155_v50 }
 0x573   : > { %4164 = vmatmul.mubr.f32.vlgmr.msra.gmra.mrb[20].mxu1 %v4013_v11 }
 0x574   : > { %4166 = vmatprep.mubr.f32.mxu1 %v1986_v34 }
 0x577   : > { %4167 = vmatmul.mubr.f32.gmra.mrb[22].mxu1 %v4016_v14 }
 0x646   : > { %v4165_v19 = vpop.f32.mrb[20].mxu1 }
 0x647   : > { %v2320_v33 = vpop.f32.mrb[21].mxu1  ;;  %v2368_v35 = vadd.f32 %v4165_v19, %v2355_v48 }
 0x648   : > { %v2367_v38 = vadd.f32 %v2350_v28, %v2320_v33 }
 0x64a   : > { %2371 = vxpose.xlu0.b32.start [1/4] (short) %v2367_v38, 128  ;;  %v4168_v43 = vpop.f32.mrb[22].mxu1 }
 0x64b   : > { %v2330_v59 = vpop.f32.mrb[23].mxu1  ;;  %v2370_v58 = vadd.f32 %v4168_v43, %v2365_v52 }
 0x64c   : > { %v2369_v46 = vadd.f32 %v2360_v40, %v2330_v59 }
 0x64e   : > { %2372 = vxpose.xlu0.b32.cont [2/4] (short) %v2368_v35, 128 }
 0x652   : > { %2373 = vxpose.xlu0.b32.cont [3/4] (short) %v2369_v46, 128 }
 0x656   : > { %2374 = vxpose.xlu0.b32.end [4/4] (short) %v2370_v58, 128 }
 0x6ca   : > { %v5419_v9 = vpop.trf.xlu0 }
 0x6cb   : > { %v2410_v17 = vmul.f32 %v3284_v2, %v5419_v9 }
 0x6cd   : > { %v2426_v23 = vsel %vm564_vm0, %v2410_v17, 0.0 }
 0x6ce   : > { %2427 = vadd.xlane.f32.xlu1 %v2426_v23  ;;  %v5423_v26 = vpop.trf.xlu0 }
 0x6cf   : > { %v2411_v31 = vmul.f32 %v3284_v2, %v5423_v26 }
 0x6d1   : > { %v2429_v36 = vsel %vm564_vm0, %v2411_v31, 0.0 }
 0x6d2   : > { %2430 = vadd.xlane.f32.xlu1 %v2429_v36  ;;  %v5427_v41 = vpop.trf.xlu0 }
 0x6d3   : > { %v2412_v45 = vmul.f32 %v3284_v2, %v5427_v41 }
 0x6d5   : > { %v2432_v50 = vsel %vm564_vm0, %v2412_v45, 0.0 }
 0x6d6   : > { %v5431_v37 = vpop.trf.xlu0  ;;  %2433 = vadd.xlane.f32.xlu1 %v2432_v50 }
 0x6d7   : > { %v2413_v39 = vmul.f32 %v3284_v2, %v5431_v37 }
 0x6d9   : > { %v2435_v42 = vsel %vm564_vm0, %v2413_v39, 0.0 }
 0x6da   : > { %2436 = vadd.xlane.f32.xlu0 %v2435_v42  ;;  %v5435_v44 = vpop.trf.xlu0 }
 0x6db   : > { %v2414_v47 = vmul.f32 %v3284_v2, %v5435_v44 }
 0x6dd   : > { %v2438_v49 = vsel %vm564_vm0, %v2414_v47, 0.0 }
 0x6de   : > { %2439 = vadd.xlane.f32.xlu1 %v2438_v49  ;;  %v5439_v51 = vpop.trf.xlu0 }
 0x6df   : > { %v2415_v53 = vmul.f32 %v3284_v2, %v5439_v51 }
 0x6e1   : > { %v2441_v54 = vsel %vm564_vm0, %v2415_v53, 0.0 }
 0x6e2   : > { %2442 = vadd.xlane.f32.xlu1 %v2441_v54  ;;  %v5443_v55 = vpop.trf.xlu0 }
 0x6e3   : > { %v2416_v57 = vmul.f32 %v3284_v2, %v5443_v55 }
 0x6e5   : > { %v2444_v60 = vsel %vm564_vm0, %v2416_v57, 0.0 }
 0x6e6   : > { %2445 = vadd.xlane.f32.xlu1 %v2444_v60  ;;  %v5447_v61 = vpop.trf.xlu0 }
 0x6e7   : > { %v2417_v63 = vmul.f32 %v3284_v2, %v5447_v61 }
 0x6e9   : > { %v2447_v0 = vsel %vm564_vm0, %v2417_v63, 0.0 }
 0x6ea   : > { %2448 = vadd.xlane.f32.xlu1 %v2447_v0  ;;  %v5451_v3 = vpop.trf.xlu0 }
 0x6eb   : > { %v2418_v20 = vmul.f32 %v3284_v2, %v5451_v3 }
 0x6ed   : > { %v2450_v5 = vsel %vm564_vm0, %v2418_v20, 0.0 }
 0x6ee   : > { %2451 = vadd.xlane.f32.xlu1 %v2450_v5  ;;  %v5455_v27 = vpop.trf.xlu0 }
 0x6ef   : > { %v2419_v6 = vmul.f32 %v3284_v2, %v5455_v27 }
 0x6f1   : > { %v2453_v56 = vsel %vm564_vm0, %v2419_v6, 0.0 }
 0x6f2   : > { %2454 = vadd.xlane.f32.xlu1 %v2453_v56  ;;  %v5459_v8 = vpop.trf.xlu0 }
 0x6f3   : > { %v2420_v62 = vmul.f32 %v3284_v2, %v5459_v8 }
 0x6f5   : > { %v2456_v12 = vsel %vm564_vm0, %v2420_v62, 0.0 }
 0x6f6   : > { %2457 = vadd.xlane.f32.xlu1 %v2456_v12  ;;  %v5463_v1 = vpop.trf.xlu0 }
 0x6f7   : > { %v2421_v13 = vmul.f32 %v3284_v2, %v5463_v1 }
 0x6f9   : > { %v2459_v4 = vsel %vm564_vm0, %v2421_v13, 0.0 }
 0x6fa   : > { %2460 = vadd.xlane.f32.xlu1 %v2459_v4  ;;  %v5467_v15 = vpop.trf.xlu0 }
 0x6fb   : > { %v2422_v16 = vmul.f32 %v3284_v2, %v5467_v15 }
 0x6fd   : > { %v2462_v18 = vsel %vm564_vm0, %v2422_v16, 0.0 }
 0x6fe   : > { %2463 = vadd.xlane.f32.xlu1 %v2462_v18  ;;  %v5471_v21 = vpop.trf.xlu0 }
 0x6ff   : > { %v2423_v22 = vmul.f32 %v3284_v2, %v5471_v21 }
 0x701   : > { %v2465_v24 = vsel %vm564_vm0, %v2423_v22, 0.0 }
 0x702   : > { %2466 = vadd.xlane.f32.xlu1 %v2465_v24  ;;  %v5475_v7 = vpop.trf.xlu0 }
 0x703   : > { %v2424_v10 = vmul.f32 %v3284_v2, %v5475_v7 }
 0x705   : > { %v2468_v25 = vsel %vm564_vm0, %v2424_v10, 0.0 }
 0x706   : > { %2469 = vadd.xlane.f32.xlu1 %v2468_v25  ;;  %v5479_v29 = vpop.trf.xlu0 }
 0x707   : > { %v2425_v30 = vmul.f32 %v3284_v2, %v5479_v29 }
 0x709   : > { %v2471_v11 = vsel %vm564_vm0, %v2425_v30, 0.0 }
 0x70a   : > { %2472 = vadd.xlane.f32.xlu1 %v2471_v11 }
 0x75b   : > { %v2428_v14 = vpop.xlane.xlu1 %2427 }
 0x75c   : > { %v2481_v34 = vadd.f32 %v5483_v32, %v2428_v14 }
 0x75e   : > { %v2498_v33 = vsel %vm2497_vm1, %v2481_v34, -inf }
 0x75f   : > { %v2431_v19 = vpop.xlane.xlu1 %2430 }
 0x760   : > { %v2482_v28 = vadd.f32 %v5483_v32, %v2431_v19 }
 0x762   : > { %v2499_v38 = vsel %vm2497_vm1, %v2482_v28, -inf }
 0x763   : > { %v2500_v43 = vmax.f32 %v2498_v33, %v2499_v38  ;;  %v2434_v48 = vpop.xlane.xlu1 %2433 }
 0x764   : > { %v2483_v35 = vadd.f32 %v5483_v32, %v2434_v48 }
 0x765   : > { %v2501_v59 = vrot.slane %v2500_v43, 4 }
 0x766   : > { %v2546_v2 = vsel %vm2497_vm1, %v2483_v35, -inf }
 0x767   : > { %v2502_v40 = vmax.f32 %v2500_v43, %v2501_v59  ;;  %v2437_v46 = vpop.xlane.xlu0 %2436 }
 0x768   : > { %v2484_v52 = vadd.f32 %v5483_v32, %v2437_v46 }
 0x769   : > { %v2503_v58 = vrot.slane %v2502_v40, 2 }
 0x76a   : > { %v2547_v17 = vsel %vm2497_vm1, %v2484_v52, -inf }
 0x76b   : > { %v2504_v23 = vmax.f32 %v2502_v40, %v2503_v58  ;;  %v2548_v31 = vmax.f32 %v2546_v2, %v2547_v17  ;;  %v2440_v36 = vpop.xlane.xlu1 %2439 }
 0x76c   : > { %v2485_v39 = vadd.f32 %v5483_v32, %v2440_v36 }
 0x76d   : > { %v2505_v45 = vrot.slane %v2504_v23, 1  ;;  %v2549_v50 = vrot.slane %v2548_v31, 4 }
 0x76e   : > { %v2594_v63 = vsel %vm2497_vm1, %v2485_v39, -inf }
 0x76f   : > { %v2506_v42 = vmax.f32 %v2504_v23, %v2505_v45  ;;  %v2550_v47 = vmax.f32 %v2548_v31, %v2549_v50  ;;  %v2443_v49 = vpop.xlane.xlu1 %2442 }
 0x770   : > { %v2486_v53 = vadd.f32 %v5483_v32, %v2443_v49 }
 0x771   : > { %v2507_v54 = vsub.f32 %v2481_v34, %v2506_v42  ;;  %v2508_v57 = vsub.f32 %v2482_v28, %v2506_v42  ;;  %v2551_v60 = vrot.slane %v2550_v47, 2 }
 0x772   : > { %v2595_v0 = vsel %vm2497_vm1, %v2486_v53, -inf }
 0x773   : > { %v2509_v20 = vmul.f32 1.442695, %v2507_v54  ;;  %v2511_v5 = vmul.f32 1.442695, %v2508_v57  ;;  %v2552_v6 = vmax.f32 %v2550_v47, %v2551_v60  ;;  %v2596_v56 = vmax.f32 %v2594_v63, %v2595_v0  ;;  %v2446_v62 = vpop.xlane.xlu1 %2445 }
 0x774   : > { %v2487_v4 = vadd.f32 %v5483_v32, %v2446_v62 }
 0x775   : > { %4692 = vpow2.f32 %v2509_v20  ;;  %v2553_v12 = vrot.slane %v2552_v6, 1  ;;  %v2597_v13 = vrot.slane %v2596_v56, 4 }
 0x776   : > { %4694 = vpow2.f32 %v2511_v5  ;;  %v2642_v11 = vsel %vm2497_vm1, %v2487_v4, -inf }
 0x777   : > { %v2554_v16 = vmax.f32 %v2552_v6, %v2553_v12  ;;  %v2598_v18 = vmax.f32 %v2596_v56, %v2597_v13  ;;  %v2449_v22 = vpop.xlane.xlu1 %2448 }
 0x778   : > { %v2488_v24 = vadd.f32 %v5483_v32, %v2449_v22 }
 0x779   : > { %v2555_v10 = vsub.f32 %v2483_v35, %v2554_v16  ;;  %v2556_v25 = vsub.f32 %v2484_v52, %v2554_v16  ;;  %v2599_v30 = vrot.slane %v2598_v18, 2 }
 0x77a   : > { %v2643_v14 = vsel %vm2497_vm1, %v2488_v24, -inf }
 0x77b   : > { %v2557_v34 = vmul.f32 1.442695, %v2555_v10  ;;  %v2559_v19 = vmul.f32 1.442695, %v2556_v25  ;;  %v2600_v28 = vmax.f32 %v2598_v18, %v2599_v30  ;;  %v2644_v33 = vmax.f32 %v2642_v11, %v2643_v14  ;;  %v2452_v38 = vpop.xlane.xlu1 %2451 }
 0x77c   : > { %v5502_v59 = vadd.f32 %v5483_v32, %v2452_v38 }
 0x77d   : > { %4696 = vpow2.f32 %v2557_v34  ;;  %v2601_v43 = vrot.slane %v2600_v28, 1  ;;  %v2645_v48 = vrot.slane %v2644_v33, 4 }
 0x77e   : > { %4698 = vpow2.f32 %v2559_v19  ;;  %v2690_v42 = vsel %vm2497_vm1, %v5502_v59, -inf }
 0x77f   : > { %v5504_v40 = vpop.eup %4692  ;;  %v2602_v35 = vmax.f32 %v2600_v28, %v2601_v43  ;;  %v2646_v46 = vmax.f32 %v2644_v33, %v2645_v48  ;;  %v2455_v52 = vpop.xlane.xlu1 %2454 }
 0x780   : > { %v5506_v58 = vpop.eup %4694  ;;  %v2513_v2 = vsel %vm2497_vm1, %v5504_v40, 0.0  ;;  %v5511_v17 = vadd.f32 %v5483_v32, %v2455_v52 }
 0x781   : > { %v2514_v23 = vsel %vm2497_vm1, %v5506_v58, 0.0  ;;  %v2603_v31 = vsub.f32 %v2485_v39, %v2602_v35  ;;  %v2604_v36 = vsub.f32 %v2486_v53, %v2602_v35  ;;  %v2647_v45 = vrot.slane %v2646_v46, 2 }
 0x782   : > { %v2515_v50 = vadd.f32 %v2514_v23, %v2513_v2  ;;  %v2691_v47 = vsel %vm2497_vm1, %v5511_v17, -inf }
 0x783   : > { %v2605_v49 = vmul.f32 1.442695, %v2603_v31  ;;  %v2607_v54 = vmul.f32 1.442695, %v2604_v36  ;;  %v2648_v57 = vmax.f32 %v2646_v46, %v2647_v45  ;;  %v2692_v60 = vmax.f32 %v2690_v42, %v2691_v47  ;;  %v2458_v63 = vpop.xlane.xlu1 %2457 }
 0x784   : > { %v2516_v0 = vrot.slane %v2515_v50, 4  ;;  %v5520_v39 = vadd.f32 %v5483_v32, %v2458_v63 }
 0x785   : > { %4700 = vpow2.f32 %v2605_v49  ;;  %v2649_v20 = vrot.slane %v2648_v57, 1  ;;  %v2693_v5 = vrot.slane %v2692_v60, 4 }
 0x786   : > { %v2517_v6 = vadd.f32 %v2516_v0, %v2515_v50  ;;  %4702 = vpow2.f32 %v2607_v54  ;;  %v2738_v34 = vsel %vm2497_vm1, %v5520_v39, -inf }
 0x787   : > { %v5522_v53 = vpop.eup %4696  ;;  %v2650_v56 = vmax.f32 %v2648_v57, %v2649_v20  ;;  %v2694_v62 = vmax.f32 %v2692_v60, %v2693_v5  ;;  %v2461_v12 = vpop.xlane.xlu1 %2460 }
 0x788   : > { %v5524_v13 = vpop.eup %4698  ;;  %v2561_v16 = vsel %vm2497_vm1, %v5522_v53, 0.0  ;;  %v5529_v18 = vadd.f32 %v5483_v32, %v2461_v12  ;;  %v2518_v22 = vrot.slane %v2517_v6, 2 }
 0x789   : > { %v2562_v10 = vsel %vm2497_vm1, %v5524_v13, 0.0  ;;  %v2651_v25 = vsub.f32 %v2487_v4, %v2650_v56  ;;  %v2652_v30 = vsub.f32 %v2488_v24, %v2650_v56  ;;  %v2695_v11 = vrot.slane %v2694_v62, 2 }
 0x78a   : > { %v2563_v14 = vadd.f32 %v2562_v10, %v2561_v16  ;;  %v2739_v19 = vsel %vm2497_vm1, %v5529_v18, -inf  ;;  %v2519_v28 = vadd.f32 %v2518_v22, %v2517_v6 }
 0x78b   : > { %v2653_v33 = vmul.f32 1.442695, %v2651_v25  ;;  %v2655_v38 = vmul.f32 1.442695, %v2652_v30  ;;  %v2696_v43 = vmax.f32 %v2694_v62, %v2695_v11  ;;  %v2740_v48 = vmax.f32 %v2738_v34, %v2739_v19  ;;  %v2464_v35 = vpop.xlane.xlu1 %2463 }
 0x78c   : > { %v2564_v46 = vrot.slane %v2563_v14, 4  ;;  %v2520_v52 = vrot.slane %v2519_v28, 1  ;;  %v5538_v23 = vadd.f32 %v5483_v32, %v2464_v35 }
 0x78d   : > { %4704 = vpow2.f32 %v2653_v33  ;;  %v2697_v2 = vrot.slane %v2696_v43, 1  ;;  %v2741_v4 = vrot.slane %v2740_v48, 4 }
 0x78e   : > { %v2565_v24 = vadd.f32 %v2564_v46, %v2563_v14  ;;  %4706 = vpow2.f32 %v2655_v38  ;;  %v2521_v31 = vadd.f32 %v2520_v52, %v2519_v28  ;;  %v2786_v6 = vsel %vm2497_vm1, %v5538_v23, -inf }
 0x78f   : > { %v5540_v36 = vpop.eup %4700  ;;  %v2698_v45 = vmax.f32 %v2696_v43, %v2697_v2  ;;  %v2742_v50 = vmax.f32 %v2740_v48, %v2741_v4  ;;  %v2467_v42 = vpop.xlane.xlu1 %2466 }
 0x790   : > { %v5542_v47 = vpop.eup %4702  ;;  %v2609_v49 = vsel %vm2497_vm1, %v5540_v36, 0.0  ;;  %v5547_v54 = vadd.f32 %v5483_v32, %v2467_v42  ;;  %4708 = vrcp.f32 %v2521_v31  ;;  %v2566_v57 = vrot.slane %v2565_v24, 2 }
 0x791   : > { %v2610_v60 = vsel %vm2497_vm1, %v5542_v47, 0.0  ;;  %v2699_v63 = vsub.f32 %v5502_v59, %v2698_v45  ;;  %v2700_v0 = vsub.f32 %v5511_v17, %v2698_v45  ;;  %v2743_v20 = vrot.slane %v2742_v50, 2 }
 0x792   : > { %v2611_v5 = vadd.f32 %v2610_v60, %v2609_v49  ;;  %v2787_v56 = vsel %vm2497_vm1, %v5547_v54, -inf  ;;  %v2567_v62 = vadd.f32 %v2566_v57, %v2565_v24 }
 0x793   : > { %v2701_v12 = vmul.f32 1.442695, %v2699_v63  ;;  %v2703_v16 = vmul.f32 1.442695, %v2700_v0  ;;  %v2744_v22 = vmax.f32 %v2742_v50, %v2743_v20  ;;  %v2788_v10 = vmax.f32 %v2786_v6, %v2787_v56  ;;  %v2470_v25 = vpop.xlane.xlu1 %2469 }
 0x794   : > { %v2612_v30 = vrot.slane %v2611_v5, 4  ;;  %v2568_v11 = vrot.slane %v2567_v62, 1  ;;  %v5558_v34 = vadd.f32 %v5483_v32, %v2470_v25 }
 0x795   : > { %4710 = vpow2.f32 %v2701_v12  ;;  %v2745_v59 = vrot.slane %v2744_v22, 1  ;;  %v2789_v14 = vrot.slane %v2788_v10, 4 }
 0x796   : > { %v2613_v17 = vadd.f32 %v2612_v30, %v2611_v5  ;;  %4712 = vpow2.f32 %v2703_v16  ;;  %v2569_v19 = vadd.f32 %v2568_v11, %v2567_v62  ;;  %v2834_v42 = vsel %vm2497_vm1, %v5558_v34, -inf }
 0x797   : > { %v5560_v28 = vpop.eup %4704  ;;  %v2746_v33 = vmax.f32 %v2744_v22, %v2745_v59  ;;  %v2790_v38 = vmax.f32 %v2788_v10, %v2789_v14  ;;  %v2473_v43 = vpop.xlane.xlu1 %2472 }
 0x798   : > { %v5562_v48 = vpop.eup %4706  ;;  %v2657_v35 = vsel %vm2497_vm1, %v5560_v28, 0.0  ;;  %v5567_v46 = vadd.f32 %v5483_v32, %v2473_v43  ;;  %4714 = vrcp.f32 %v2569_v19  ;;  %v2614_v52 = vrot.slane %v2613_v17, 2 }
 0x799   : > { %v2658_v2 = vsel %vm2497_vm1, %v5562_v48, 0.0  ;;  %v2747_v4 = vsub.f32 %v5520_v39, %v2746_v33  ;;  %v2748_v24 = vsub.f32 %v5529_v18, %v2746_v33  ;;  %v2791_v31 = vrot.slane %v2790_v38, 2 }
 0x79a   : > { %v4709_v45 = vpop.eup %4708  ;;  %v2659_v50 = vadd.f32 %v2658_v2, %v2657_v35  ;;  %v2835_v49 = vsel %vm2497_vm1, %v5567_v46, -inf  ;;  %v2615_v32 = vadd.f32 %v2614_v52, %v2613_v17 }
 0x79b   : > { %v2749_v57 = vmul.f32 1.442695, %v2747_v4  ;;  %v2751_v60 = vmul.f32 1.442695, %v2748_v24  ;;  %v2792_v63 = vmax.f32 %v2790_v38, %v2791_v31  ;;  %v2836_v0 = vmax.f32 %v2834_v42, %v2835_v49 }
 0x79c   : > { %v2660_v20 = vrot.slane %v2659_v50, 4  ;;  %v2523_v5 = vmul.f32 %v4709_v45, %v5504_v40  ;;  %v2616_v39 = vrot.slane %v2615_v32, 1  ;;  %v2524_v30 = vmul.f32 %v4709_v45, %v5506_v58 }
 0x79d   : > { %4716 = vpow2.f32 %v2749_v57  ;;  %v2793_v18 = vrot.slane %v2792_v63, 1  ;;  %v2837_v6 = vrot.slane %v2836_v0, 4 }
 0x79e   : > { %v2661_v56 = vadd.f32 %v2660_v20, %v2659_v50  ;;  %4718 = vpow2.f32 %v2751_v60  ;;  %2527 = vperm.xlu1 %4691, %v2523_v5   ;;  %v2617_v62 = vadd.f32 %v2616_v39, %v2615_v32 }
 0x79f   : > { %v5578_v12 = vpop.eup %4710  ;;  %v2794_v16 = vmax.f32 %v2792_v63, %v2793_v18  ;;  %v2838_v22 = vmax.f32 %v2836_v0, %v2837_v6 }
 0x7a0   : > { %v5580_v10 = vpop.eup %4712  ;;  %v2705_v25 = vsel %vm2497_vm1, %v5578_v12, 0.0  ;;  %4720 = vrcp.f32 %v2617_v62  ;;  %v2662_v40 = vrot.slane %v2661_v56, 2 }
 0x7a1   : > { %v2706_v11 = vsel %vm2497_vm1, %v5580_v10, 0.0  ;;  %v2795_v59 = vsub.f32 %v5538_v23, %v2794_v16  ;;  %v2796_v14 = vsub.f32 %v5547_v54, %v2794_v16  ;;  %v2839_v17 = vrot.slane %v2838_v22, 2 }
 0x7a2   : > { %v4715_v19 = vpop.eup %4714  ;;  %v2707_v33 = vadd.f32 %v2706_v11, %v2705_v25  ;;  %2532 = vperm.xlu1 %4691, %v2524_v30   ;;  %v2663_v38 = vadd.f32 %v2662_v40, %v2661_v56 }
 0x7a3   : > { %v2797_v43 = vmul.f32 1.442695, %v2795_v59  ;;  %v2799_v35 = vmul.f32 1.442695, %v2796_v14  ;;  %v2840_v52 = vmax.f32 %v2838_v22, %v2839_v17  ;;  %v2571_v2 = vmul.f32 %v4715_v19, %v5522_v53 }
 0x7a4   : > { %v2708_v58 = vrot.slane %v2707_v33, 4  ;;  %v2664_v4 = vrot.slane %v2663_v38, 1  ;;  %v2572_v49 = vmul.f32 %v4715_v19, %v5524_v13 }
 0x7a5   : > { %4722 = vpow2.f32 %v2797_v43  ;;  %v2841_v24 = vrot.slane %v2840_v52, 1 }
 0x7a6   : > { %v2709_v31 = vadd.f32 %v2708_v58, %v2707_v33  ;;  %4724 = vpow2.f32 %v2799_v35  ;;  %2575 = vperm.xlu1 %4691, %v2571_v2   ;;  %v2665_v23 = vadd.f32 %v2664_v4, %v2663_v38 }
 0x7a7   : > { %v5590_v45 = vpop.eup %4716  ;;  %v2842_v54 = vmax.f32 %v2840_v52, %v2841_v24 }
 0x7a8   : > { %v5592_v50 = vpop.eup %4718  ;;  %v2753_v42 = vsel %vm2497_vm1, %v5590_v45, 0.0  ;;  %4726 = vrcp.f32 %v2665_v23  ;;  %v2710_v53 = vrot.slane %v2709_v31, 2 }
 0x7a9   : > { %v2754_v32 = vsel %vm2497_vm1, %v5592_v50, 0.0  ;;  %v2843_v57 = vsub.f32 %v5558_v34, %v2842_v54  ;;  %v2844_v60 = vsub.f32 %v5567_v46, %v2842_v54 }
 0x7aa   : > { %v4721_v63 = vpop.eup %4720  ;;  %v2755_v0 = vadd.f32 %v2754_v32, %v2753_v42  ;;  %2580 = vperm.xlu1 %4691, %v2572_v49   ;;  %v2711_v20 = vadd.f32 %v2710_v53, %v2709_v31 }
 0x7ab   : > { %v2845_v5 = vmul.f32 1.442695, %v2843_v57  ;;  %v2847_v39 = vmul.f32 1.442695, %v2844_v60  ;;  %v2619_v18 = vmul.f32 %v4721_v63, %v5540_v36  ;;  %v2620_v46 = vmul.f32 %v4721_v63, %v5542_v47 }
 0x7ac   : > { %v2756_v6 = vrot.slane %v2755_v0, 4  ;;  %v2712_v56 = vrot.slane %v2711_v20, 1 }
 0x7ad   : > { %4728 = vpow2.f32 %v2845_v5 }
 0x7ae   : > { %v2757_v13 = vadd.f32 %v2756_v6, %v2755_v0  ;;  %4730 = vpow2.f32 %v2847_v39  ;;  %2623 = vperm.xlu1 %4691, %v2619_v18   ;;  %v2713_v62 = vadd.f32 %v2712_v56, %v2711_v20  ;;  %v4753_v56 = vmov 0.0|0.0  }
 0x7af   : > { %v4723_v16 = vpop.eup %4722  ;;  %4617 = vmatprep.subr.bf16.mxu0 %v4753_v56 }
 0x7b0   : > { %v4725_v22 = vpop.eup %4724  ;;  %v2801_v34 = vsel %vm2497_vm1, %v4723_v16, 0.0  ;;  %4732 = vrcp.f32 %v2713_v62  ;;  %v2758_v25 = vrot.slane %v2757_v13, 2  ;;  %v2899_v62 = vld [vmem:[%s5743_s10 + $0x18] sm:$0xff] }
 0x7b1   : > { %v2802_v30 = vsel %vm2497_vm1, %v4725_v22, 0.0 }
 0x7b2   : > { %v4727_v40 = vpop.eup %4726  ;;  %v2803_v11 = vadd.f32 %v2802_v30, %v2801_v34  ;;  %2628 = vperm.xlu1 %4691, %v2620_v46   ;;  %v2759_v36 = vadd.f32 %v2758_v25, %v2757_v13  ;;  %v2898_v13 = vld [vmem:[%s5743_s10 + $0x10] sm:$0xff] }
 0x7b3   : > { %v2667_v59 = vmul.f32 %v4727_v40, %v5560_v28  ;;  %v2668_v47 = vmul.f32 %v4727_v40, %v5562_v48 }
 0x7b4   : > { %v2804_v14 = vrot.slane %v2803_v11, 4  ;;  %v2760_v17 = vrot.slane %v2759_v36, 1 }
 0x7b6   : > { %v2805_v19 = vadd.f32 %v2804_v14, %v2803_v11  ;;  %2671 = vperm.xlu1 %4691, %v2667_v59   ;;  %v2761_v33 = vadd.f32 %v2760_v17, %v2759_v36 }
 0x7b7   : > { %v4729_v38 = vpop.eup %4728 }
 0x7b8   : > { %v4731_v43 = vpop.eup %4730  ;;  %v2849_v35 = vsel %vm2497_vm1, %v4729_v38, 0.0  ;;  %4734 = vrcp.f32 %v2761_v33  ;;  %v2806_v52 = vrot.slane %v2805_v19, 2 }
 0x7b9   : > { %v2850_v2 = vsel %vm2497_vm1, %v4731_v43, 0.0 }
 0x7ba   : > { %v4733_v58 = vpop.eup %4732  ;;  %v2851_v4 = vadd.f32 %v2850_v2, %v2849_v35  ;;  %2676 = vperm.xlu1 %4691, %v2668_v47   ;;  %v2807_v24 = vadd.f32 %v2806_v52, %v2805_v19 }
 0x7bb   : > { %v2715_v28 = vmul.f32 %v4733_v58, %v5578_v12  ;;  %v2716_v31 = vmul.f32 %v4733_v58, %v5580_v10 }
 0x7bc   : > { %v2852_v23 = vrot.slane %v2851_v4, 4  ;;  %v2808_v54 = vrot.slane %v2807_v24, 1 }
 0x7bd   : > { %2719 = vperm.xlu0 %4690, %v2715_v28  }
 0x7be   : > { %v2853_v42 = vadd.f32 %v2852_v23, %v2851_v4  ;;  %2724 = vperm.xlu1 %4691, %v2716_v31   ;;  %v2809_v49 = vadd.f32 %v2808_v54, %v2807_v24 }
 0x7c0   : > { %4736 = vrcp.f32 %v2809_v49  ;;  %v2854_v48 = vrot.slane %v2853_v42, 2 }
 0x7c2   : > { %v4735_v53 = vpop.eup %4734  ;;  %v2855_v32 = vadd.f32 %v2854_v48, %v2853_v42 }
 0x7c3   : > { %v2763_v57 = vmul.f32 %v4735_v53, %v5590_v45  ;;  %v2764_v0 = vmul.f32 %v4735_v53, %v5592_v50  ;;  %v2896_v45 = vld [vmem:[%s5743_s10] sm:$0xff]  ;;  %v2897_v50 = vld [vmem:[%s5743_s10 + $0x8] sm:$0xff] }
 0x7c4   : > { %v2856_v60 = vrot.slane %v2855_v32, 1  ;;  %v4618_v6 = vpack.c.bf16 %v2897_v50, %v2896_v45 }
 0x7c5   : > { %2767 = vperm.xlu1 %4691, %v2763_v57  }
 0x7c6   : > { %v2857_v63 = vadd.f32 %v2856_v60, %v2855_v32  ;;  %4619 = vmatpush3.bf16.msra.mxu0 %v4618_v6 }
 0x7c7   : > { %4620 = vmatprep.subr.bf16.mxu0 %v4753_v56 }
 0x7c8   : > { %4738 = vrcp.f32 %v2857_v63 }
 0x7c9   : > { %2772 = vperm.xlu1 %4691, %v2764_v0  }
 0x7ca   : > { %v4737_v12 = vpop.eup %4736 }
 0x7cb   : > { %v2811_v10 = vmul.f32 %v4737_v12, %v4723_v16  ;;  %v2812_v20 = vmul.f32 %v4737_v12, %v4725_v22  ;;  %v4621_v16 = vpack.c.bf16 %v2899_v62, %v2898_v13  ;;  %v4755_v22 = vmov 0.0  }
 0x7cc   : > { %4177 = vmatprep.mubr.msk.f32.mxu0 %vm4754_vm2, %v4755_v22 }
 0x7cd   : > { %2815 = vperm.xlu1 %4691, %v2811_v10   ;;  %4622 = vmatpush3.bf16.msra.mxu0 %v4621_v16 }
 0x7ce   : > { %4623 = vmatprep.subr.bf16.mxu0 %v4753_v56 }
 0x7d1   : > { %2820 = vperm.xlu1 %4691, %v2812_v20  }
 0x7d2   : > { %v4739_v5 = vpop.eup %4738 }
 0x7d3   : > { %v2859_v39 = vmul.f32 %v4739_v5, %v4729_v38  ;;  %v2860_v18 = vmul.f32 %v4739_v5, %v4731_v43 }
 0x7d5   : > { %2863 = vperm.xlu0 %4690, %v2859_v39   ;;  %2868 = vperm.xlu1 %4691, %v2860_v18  }
 0x81d   : > { %v2528_v34 = vpop.permute.xlu1 %2527 }
 0x81e   : > { %v2535_v58 = vmul.f32 %v2528_v34, %v5419_v9 }
 0x820   : > { %v2537_v28 = vsel %vm564_vm0, %v2535_v58, 0.0 }
 0x821   : > { %v2533_v46 = vpop.permute.xlu1 %2532 }
 0x822   : > { %v2536_v38 = vmul.f32 %v2533_v46, %v5423_v26 }
 0x824   : > { %v2538_v26 = vsel %vm564_vm0, %v2536_v38, 0.0 }
 0x825   : > { %v2576_v25 = vpop.permute.xlu1 %2575  ;;  %v2539_v23 = vadd.f32 %v2538_v26, %v2537_v28 }
 0x826   : > { %v2583_v43 = vmul.f32 %v2576_v25, %v5427_v41 }
 0x827   : > { %v2540_v60 = vrot.slane %v2539_v23, 4 }
 0x828   : > { %v2585_v41 = vsel %vm564_vm0, %v2583_v43, 0.0 }
 0x829   : > { %v2581_v30 = vpop.permute.xlu1 %2580  ;;  %v2541_v45 = vadd.f32 %v2540_v60, %v2539_v23 }
 0x82a   : > { %v2584_v14 = vmul.f32 %v2581_v30, %v5431_v37 }
 0x82b   : > { %v2542_v25 = vrot.slane %v2541_v45, 2 }
 0x82c   : > { %v2586_v37 = vsel %vm564_vm0, %v2584_v14, 0.0 }
 0x82d   : > { %v2624_v40 = vpop.permute.xlu1 %2623  ;;  %v2587_v24 = vadd.f32 %v2586_v37, %v2585_v41 }
 0x82e   : > { %v2631_v47 = vmul.f32 %v2624_v40, %v5435_v44 }
 0x82f   : > { %v2588_v48 = vrot.slane %v2587_v24, 4 }
 0x830   : > { %v2633_v44 = vsel %vm564_vm0, %v2631_v47, 0.0 }
 0x831   : > { %v2629_v11 = vpop.permute.xlu1 %2628  ;;  %v2589_v20 = vadd.f32 %v2588_v48, %v2587_v24 }
 0x832   : > { %v2632_v33 = vmul.f32 %v2629_v11, %v5439_v51 }
 0x833   : > { %v2590_v62 = vrot.slane %v2589_v20, 2 }
 0x834   : > { %v2634_v51 = vsel %vm564_vm0, %v2632_v33, 0.0 }
 0x835   : > { %v2672_v36 = vpop.permute.xlu1 %2671  ;;  %v2635_v31 = vadd.f32 %v2634_v51, %v2633_v44 }
 0x836   : > { %v2679_v4 = vmul.f32 %v2672_v36, %v5443_v55 }
 0x837   : > { %v2636_v32 = vrot.slane %v2635_v31, 4 }
 0x838   : > { %v2681_v55 = vsel %vm564_vm0, %v2679_v4, 0.0 }
 0x839   : > { %v2677_v59 = vpop.permute.xlu1 %2676  ;;  %v2637_v18 = vadd.f32 %v2636_v32, %v2635_v31 }
 0x83a   : > { %v2680_v35 = vmul.f32 %v2677_v59, %v5447_v61  ;;  %v2591_v59 = vadd.f32 %v2590_v62, %v2589_v20  ;;  %v2985_v62 = vld [vmem:[%s5745_s12 + $0x20] sm:$0xff] }
 0x83b   : > { %v2638_v34 = vrot.slane %v2637_v18, 2 }
 0x83c   : > { %v2720_v19 = vpop.permute.xlu0 %2719  ;;  %v2682_v61 = vsel %vm564_vm0, %v2680_v35, 0.0  ;;  %v2543_v35 = vadd.f32 %v2542_v25, %v2541_v45  ;;  %v2592_v37 = vrot.slane %v2591_v59, 1 }
 0x83d   : > { %v2725_v17 = vpop.permute.xlu1 %2724  ;;  %v2727_v2 = vmul.f32 %v2720_v19, %v5451_v3  ;;  %v2683_v54 = vadd.f32 %v2682_v61, %v2681_v55  ;;  %v2639_v38 = vadd.f32 %v2638_v34, %v2637_v18  ;;  %v2987_v34 = vld [vmem:[%s5745_s12 + $0x30] sm:$0xff] }
 0x83e   : > { %v2728_v52 = vmul.f32 %v2725_v17, %v5455_v27  ;;  %v2544_v61 = vrot.slane %v2543_v35, 1 }
 0x83f   : > { %v2729_v3 = vsel %vm564_vm0, %v2727_v2, 0.0  ;;  %v2684_v63 = vrot.slane %v2683_v54, 4  ;;  %v2640_v41 = vrot.slane %v2639_v38, 1 }
 0x840   : > { %v2730_v27 = vsel %vm564_vm0, %v2728_v52, 0.0  ;;  %v2545_v55 = vadd.f32 %v2544_v61, %v2543_v35 }
 0x841   : > { %v2731_v42 = vadd.f32 %v2730_v27, %v2729_v3  ;;  %v2685_v50 = vadd.f32 %v2684_v63, %v2683_v54  ;;  %v2593_v3 = vadd.f32 %v2592_v37, %v2591_v59  ;;  %v2641_v31 = vadd.f32 %v2640_v41, %v2639_v38  ;;  %v2981_v63 = vld [vmem:[%s5745_s12] sm:$0xff]  ;;  %v2992_v59 = vld [vmem:[%s5745_s12 + $0x58] sm:$0xff] }
 0x842   : > { %v3292_v37 = vld [vmem:[#allocation3] ss:$0 sm:$0xff] }
 0x843   : > { %v2732_v0 = vrot.slane %v2731_v42, 4  ;;  %v2686_v30 = vrot.slane %v2685_v50, 2  ;;  %v2883_v48 = vsel %vm2882_vm3, %v2545_v55, %v2593_v3 }
 0x844   : > { %v2768_v9 = vpop.permute.xlu1 %2767 }
 0x845   : > { %v2775_v49 = vmul.f32 %v2768_v9, %v5459_v8  ;;  %v2733_v8 = vadd.f32 %v2732_v0, %v2731_v42  ;;  %v2687_v47 = vadd.f32 %v2686_v30, %v2685_v50  ;;  %v2982_v0 = vld [vmem:[%s5745_s12 + $0x8] sm:$0xff]  ;;  %v2983_v50 = vld [vmem:[%s5745_s12 + $0x10] sm:$0xff]  ;;  %v2989_v30 = vld [vmem:[%s5745_s12 + $0x40] sm:$0xff] }
 0x846   : > { %v4624_v18 = vpack.c.bf16 %v2982_v0, %v2981_v63 }
 0x847   : > { %v2777_v12 = vsel %vm564_vm0, %v2775_v49, 0.0  ;;  %v2734_v40 = vrot.slane %v2733_v8, 2  ;;  %v2688_v24 = vrot.slane %v2687_v47, 1 }
 0x848   : > { %v2773_v53 = vpop.permute.xlu1 %2772 }
 0x849   : > { %v2776_v57 = vmul.f32 %v2773_v53, %v5463_v1  ;;  %v2735_v52 = vadd.f32 %v2734_v40, %v2733_v8  ;;  %v2689_v23 = vadd.f32 %v2688_v24, %v2687_v47  ;;  %v2990_v40 = vld [vmem:[%s5745_s12 + $0x48] sm:$0xff] }
 0x84b   : > { %v2778_v10 = vsel %vm564_vm0, %v2776_v57, 0.0  ;;  %v2885_v57 = vsel %vm2884_vm4, %v2883_v48, %v2641_v31 }
 0x84c   : > { %v2779_v5 = vadd.f32 %v2778_v10, %v2777_v12  ;;  %v2816_v39 = vpop.permute.xlu1 %2815  ;;  %v2887_v12 = vsel %vm2886_vm5, %v2885_v57, %v2689_v23 }
 0x84d   : > { %v2823_v13 = vmul.f32 %v2816_v39, %v5467_v15 }
 0x84e   : > { %v2780_v6 = vrot.slane %v2779_v5, 4 }
 0x84f   : > { %v2825_v11 = vsel %vm564_vm0, %v2823_v13, 0.0 }
 0x850   : > { %v2781_v16 = vadd.f32 %v2780_v6, %v2779_v5  ;;  %v2821_v1 = vpop.permute.xlu1 %2820  ;;  %v2984_v6 = vld [vmem:[%s5745_s12 + $0x18] sm:$0xff] }
 0x851   : > { %v2824_v46 = vmul.f32 %v2821_v1, %v5471_v21  ;;  %v4627_v13 = vpack.c.bf16 %v2984_v6, %v2983_v50 }
 0x852   : > { %v2782_v14 = vrot.slane %v2781_v16, 2 }
 0x853   : > { %v2826_v36 = vsel %vm564_vm0, %v2824_v46, 0.0  ;;  %v2988_v46 = vld [vmem:[%s5745_s12 + $0x38] sm:$0xff] }
 0x854   : > { %v2827_v17 = vadd.f32 %v2826_v36, %v2825_v11  ;;  %v2869_v19 = vpop.permute.xlu1 %2868  ;;  %v2864_v33 = vpop.permute.xlu0 %2863  ;;  %v2783_v4 = vadd.f32 %v2782_v14, %v2781_v16  ;;  %v2986_v16 = vld [vmem:[%s5745_s12 + $0x28] sm:$0xff]  ;;  %v4633_v25 = vpack.c.bf16 %v2988_v46, %v2987_v34  ;;  %v4636_v11 = vpack.c.bf16 %v2990_v40, %v2989_v30  ;;  %v2991_v36 = vld [vmem:[%s5745_s12 + $0x50] sm:$0xff] }
 0x855   : > { %v2872_v15 = vmul.f32 %v2869_v19, %v5479_v29  ;;  %v2871_v43 = vmul.f32 %v2864_v33, %v5475_v7  ;;  %v2736_v29 = vrot.slane %v2735_v52, 1  ;;  %v4630_v1 = vpack.c.bf16 %v2986_v16, %v2985_v62 }
 0x856   : > { %v2828_v21 = vrot.slane %v2827_v17, 4  ;;  %v2784_v7 = vrot.slane %v2783_v4, 1  ;;  %v4639_v14 = vpack.c.bf16 %v2992_v59, %v2991_v36 }
 0x857   : > { %v2874_v2 = vsel %vm564_vm0, %v2872_v15, 0.0  ;;  %v2873_v58 = vsel %vm564_vm0, %v2871_v43, 0.0  ;;  %v2737_v49 = vadd.f32 %v2736_v29, %v2735_v52 }
 0x858   : > { %v2829_v51 = vadd.f32 %v2828_v21, %v2827_v17  ;;  %v2875_v26 = vadd.f32 %v2874_v2, %v2873_v58  ;;  %v2785_v53 = vadd.f32 %v2784_v7, %v2783_v4  ;;  %v2993_v17 = vld [vmem:[%s5745_s12 + $0x60] sm:$0xf] }
 0x859   : > { %v2889_v20 = vsel %vm2888_vm6, %v2887_v12, %v2737_v49  ;;  %v3291_v21 = vld [vmem:[%s5747_s14] ss:$0 sm:$0xff] }
 0x85a   : > { %v2830_v44 = vrot.slane %v2829_v51, 2  ;;  %v2876_v27 = vrot.slane %v2875_v26, 4  ;;  %v2891_v39 = vsel %vm2890_vm7, %v2889_v20, %v2785_v53 }
 0x85c   : > { %v2831_v9 = vadd.f32 %v2830_v44, %v2829_v51  ;;  %v2877_v28 = vadd.f32 %v2876_v27, %v2875_v26 }
 0x85e   : > { %v2832_v54 = vrot.slane %v2831_v9, 1  ;;  %v2878_v42 = vrot.slane %v2877_v28, 2 }
 0x860   : > { %v2879_v32 = vadd.f32 %v2878_v42, %v2877_v28  ;;  %v2833_v60 = vadd.f32 %v2832_v54, %v2831_v9 }
 0x862   : > { %v2880_v10 = vrot.slane %v2879_v32, 1  ;;  %v2893_v45 = vsel %vm2892_vm8, %v2891_v39, %v2833_v60 }
 0x864   : > { %v2881_v5 = vadd.f32 %v2880_v10, %v2879_v32 }
 0x866   : > { %v5675_v8 = vsel %vm2894_vm9, %v2893_v45, %v2881_v5 }
 0x867   : > { %4178 = vmatmul.mubr.msk.f32.vlgmr.msra.gmra.mrb[40].mxu0 %vm564_vm0, %v5675_v8 }
 0x868   : > { %4625 = vmatpush3.bf16.msra.mxu0 %v4624_v18  ;;  %4206 = vmatprep.mubr.msk.f32.mxu0 %vm4754_vm2, %v4755_v22 }
 0x869   : > { %4626 = vmatprep.subr.bf16.mxu0 %v4753_v56 }
 0x86c   : > { %4628 = vmatpush3.bf16.msra.mxu0 %v4627_v13 }
 0x86d   : > { %4629 = vmatprep.subr.bf16.mxu0 %v4753_v56 }
 0x870   : > { %4631 = vmatpush3.bf16.msra.mxu0 %v4630_v1 }
 0x871   : > { %4632 = vmatprep.subr.bf16.mxu0 %v4753_v56 }
 0x874   : > { %4634 = vmatpush3.bf16.msra.mxu0 %v4633_v25 }
 0x875   : > { %4635 = vmatprep.subr.bf16.mxu0 %v4753_v56 }
 0x878   : > { %4637 = vmatpush3.bf16.msra.mxu0 %v4636_v11 }
 0x879   : > { %4638 = vmatprep.subr.bf16.mxu0 %v4753_v56  ;;  %v3286_v56 = vld [vmem:[%s5744_s11] ss:$0 sm:$0xff] }
 0x87c   : > { %4640 = vmatpush3.bf16.msra.mxu0 %v4639_v14 }
 0x87d   : > { %4204 = vmatprep.subr.mxu0 %v4755_v22  ;;  %v3288_v22 = vld [vmem:[%s5746_s13] ss:$0 sm:$0xff] }
 0x880   : > { %4205 = vmatpush3.msk.msra.mxu0 %vm2888_vm6, %v2993_v17 }
 0x93a   : > { %v2976_v19 = vpop.f32.mrb[40].mxu0 }
 0x93b   : > { %v2977_v33 = vadd.f32 %v3286_v56, %v2976_v19  ;;  %v4179_v38 = vpop.f32.mrb[41].mxu0 }
 0x93d   : > { %v2980_v15 = vmax.f32 %v2977_v33, 0.0 }
 0x93f   : > { %4207 = vmatmul.mubr.msk.f32.vlgmr.msra.gmra.mrb[42].mxu0 %vm3001_vm10, %v2980_v15 }
 0xa12   : > { %v3074_v43 = vpop.f32.mrb[42].mxu0 }
 0xa13   : > { %v3075_v35 = vadd.f32 %v3288_v22, %v3074_v43  ;;  %v4208_v47 = vpop.f32.mrb[43].mxu0 }
 0xa15   : > { %v3078_v52 = vmax.f32 %v3075_v35, 0.0 }
 0xa17   : > { %v3086_v2 = vmul.f32 %v3291_v21, %v3078_v52 }
 0xa19   : > { %v3088_v58 = vsel %vm3087_vm11, %v3086_v2, 0.0 }
 0xa1a   : > { %3089 = vadd.xlane.f32.xlu0 %v3088_v58 }
 0xaa7   : > { %v3090_v4 = vpop.xlane.xlu0 %3089 }
 0xaa8   : > { %v3098_v51 = vadd.f32 %v3292_v37, %v3090_v4 }
 0xaaa   : > { %v3293_v26 = vmul.f32 -1.442695, %v3098_v51 }
 0xaac   : > { %4740 = vpow2.f32 %v3293_v26 }
 0xab6   : > { %v4741_v41 = vpop.eup %4740 }
 0xab7   : > { %v3102_v61 = vadd.f32 1.0, %v4741_v41 }
 0xab9   : > { %4742 = vrcp.f32 %v3102_v61 }
 0xac3   : > { %v4743_v24 = vpop.eup %4742 }
 0xac4   : > { %3106 = vrot.lane.b32.xlu1 %v4743_v24, %s4756_s20 }
 0xb36   : > { %v3107_v44 = vpop.permute.xlu1 %3106 }
 0xb37   : > { %v3109_v27 = vsel %vm564_vm0, %v5675_v8, %v3107_v44 }
 0xb38   : > { %v3111_v29 = vsel %vm3110_vm12, %v3109_v27, 0.0 }
 0xb39   : > { %3112 = vst [vmem:[%s543_s23] sm:$0xff] %v3111_v29 }
 0xb3a PF: > { %s30_s25 = sadd.s32 1, %s4750_s25  }
 0xb3b   : > { %p27_p4 = scmp.ge.s32.totalorder %s30_s25, 4  }
 0xb3d   :  { %29 = sbr.rel (!%p27_p4) target bundleno = 3 (0x3), region = 120 }

</bundles_post_ra>
